<compile_context>
chip_gen: v7x
topology: tpu7x:2x2x1
jax: 0.10.0
libtpu: 0.0.40
codegen_flags: <defaults>
</compile_context>

<pallas_src>
import functools

import jax
import jax.numpy as jnp
from jax.experimental import pallas as pl
from jax.experimental.pallas import tpu as pltpu

# ---- config (small, consistent with the module's forward) -------------------
BATCH   = 2
SEQ     = 8
D_MODEL = 32
N_HEADS = 4
D_HEAD  = D_MODEL // N_HEADS
D_FF    = 64
EPS     = 1e-5   # nn.LayerNorm default


def encoder_layer_kernel(x_ref,
                         wq_ref, bq_ref, wk_ref, bk_ref, wv_ref, bv_ref,
                         wo_ref, bo_ref,
                         g1_ref, beta1_ref,
                         w1_ref, b1_ref, w2_ref, b2_ref,
                         g2_ref, beta2_ref,
                         o_ref,
                         *, batch, seq, n_heads, d_head):
    d_model = n_heads * d_head
    xf = x_ref[...]                                        # (B*S, D)

    # Replicate x over the head axis (leading-dim broadcast, cheap) so q/k/v
    # come out per-(batch, head) directly from single batched dots.
    xb = jnp.broadcast_to(
        xf.reshape(batch, 1, seq, d_model),
        (batch, n_heads, seq, d_model),
    ).reshape(batch * n_heads, seq, d_model)               # (BH, S, D)

    # ---- multi-head self-attention (batched over BH = batch*heads) ----
    q = jnp.einsum('nsd,nde->nse', xb, wq_ref[...],
                   preferred_element_type=jnp.float32) + bq_ref[...]
    k = jnp.einsum('nsd,nde->nse', xb, wk_ref[...],
                   preferred_element_type=jnp.float32) + bk_ref[...]
    v = jnp.einsum('nsd,nde->nse', xb, wv_ref[...],
                   preferred_element_type=jnp.float32) + bv_ref[...]

    scale = 1.0 / (d_head ** 0.5)
    scores = jnp.einsum('nqe,nke->nqk', q, k,
                        preferred_element_type=jnp.float32) * scale
    # TODO(synk): attention_mask path not implemented (forward default is None)
    scores = scores - jnp.max(scores, axis=-1, keepdims=True)
    p = jnp.exp(scores)
    p = p * pl.reciprocal(jnp.sum(p, axis=-1, keepdims=True), approx=True)
    ctx = jnp.einsum('nqk,nke->nqe', p, v,
                     preferred_element_type=jnp.float32)   # (BH, S, dh)

    # Per-head output projection; summing head contributions is equivalent to
    # concat(heads) @ Wo, without any lane-concat.
    attn_h = jnp.einsum('nse,ned->nsd', ctx, wo_ref[...],
                        preferred_element_type=jnp.float32)        # (BH, S, D)
    attn4 = attn_h.reshape(batch, n_heads, seq, d_model)
    attn = attn4[:, 0]
    for h in range(1, n_heads):                                     # 3 vector adds
        attn = attn + attn4[:, h]
    attn = attn.reshape(batch * seq, d_model) + bo_ref[...]         # (B*S, D)

    # ---- residual + LayerNorm1 (dropout == identity in eval) ----
    h1 = xf + attn
    mu = jnp.mean(h1, axis=-1, keepdims=True)
    var = jnp.mean((h1 - mu) ** 2, axis=-1, keepdims=True)
    h1n = (h1 - mu) * jax.lax.rsqrt(var + EPS) * g1_ref[...] + beta1_ref[...]

    # ---- feed-forward: Linear -> ReLU -> Linear, on the full (B*S, D) slab ----
    f = jnp.dot(h1n, w1_ref[...], preferred_element_type=jnp.float32) + b1_ref[...]
    f = jnp.maximum(f, 0.0)
    f = jnp.dot(f, w2_ref[...], preferred_element_type=jnp.float32) + b2_ref[...]

    # ---- residual + LayerNorm2 ----
    h2 = h1n + f
    mu2 = jnp.mean(h2, axis=-1, keepdims=True)
    var2 = jnp.mean((h2 - mu2) ** 2, axis=-1, keepdims=True)
    o_ref[...] = (h2 - mu2) * jax.lax.rsqrt(var2 + EPS) * g2_ref[...] + beta2_ref[...]


def _prepare_params(params, batch):
    """Pre-split attention weights per head (and replicate over batch) so the
    kernel can use single-batch-dim contractions with no in-kernel slicing."""
    (wq, bq, wk, bk, wv, bv, wo, bo,
     g1, beta1, w1, b1, w2, b2, g2, beta2) = params
    H, dh, D = N_HEADS, D_HEAD, D_MODEL

    def split_in(w):      # (D, D) -> (B*H, D, dh): per-head column blocks
        wh = w.reshape(D, H, dh).transpose(1, 0, 2)
        return jnp.tile(wh[None], (batch, 1, 1, 1)).reshape(batch * H, D, dh)

    def split_bias(b):    # (1, D) -> (B*H, 1, dh)
        bh = b.reshape(H, 1, dh)
        return jnp.tile(bh[None], (batch, 1, 1, 1)).reshape(batch * H, 1, dh)

    def split_out(w):     # (D, D) -> (B*H, dh, D): per-head row blocks
        wh = w.reshape(H, dh, D)
        return jnp.tile(wh[None], (batch, 1, 1, 1)).reshape(batch * H, dh, D)

    return (split_in(wq), split_bias(bq),
            split_in(wk), split_bias(bk),
            split_in(wv), split_bias(bv),
            split_out(wo), bo,
            g1, beta1, w1, b1, w2, b2, g2, beta2)


@jax.jit
def transformer_encoder_layer(x, params):
    B, S, D = x.shape
    prepared = _prepare_params(params, B)
    xf = x.reshape(B * S, D)                      # lane layout unchanged, free

    vmem = pl.BlockSpec(memory_space=pltpu.MemorySpace.VMEM)
    kernel = functools.partial(encoder_layer_kernel,
                               batch=B, seq=S, n_heads=N_HEADS, d_head=D_HEAD)
    out = pl.pallas_call(
        kernel,
        out_shape=jax.ShapeDtypeStruct((B * S, D), jnp.float32),
        in_specs=[vmem] * (1 + len(prepared)),
        out_specs=vmem,
    )(xf, *prepared)
    return out.reshape(B, S, D)


# ---- pure-JAX reference for a correctness sanity check ----------------------
def reference(x, params):
    (wq, bq, wk, bk, wv, bv, wo, bo,
     g1, beta1, w1, b1, w2, b2, g2, beta2) = params

    def ln(h, g, b):
        mu = jnp.mean(h, axis=-1, keepdims=True)
        var = jnp.mean((h - mu) ** 2, axis=-1, keepdims=True)
        return (h - mu) / jnp.sqrt(var + EPS) * g + b

    q = x @ wq + bq
    k = x @ wk + bk
    v = x @ wv + bv
    B, S, D = x.shape
    qh = q.reshape(B, S, N_HEADS, D_HEAD).transpose(0, 2, 1, 3)
    kh = k.reshape(B, S, N_HEADS, D_HEAD).transpose(0, 2, 1, 3)
    vh = v.reshape(B, S, N_HEADS, D_HEAD).transpose(0, 2, 1, 3)
    s = jnp.einsum("bhqd,bhkd->bhqk", qh, kh) / jnp.sqrt(jnp.float32(D_HEAD))
    p = jax.nn.softmax(s, axis=-1)
    a = jnp.einsum("bhqk,bhkd->bhqd", p, vh).transpose(0, 2, 1, 3).reshape(B, S, D)
    a = a @ wo + bo
    h1 = ln(x + a, g1, beta1)
    f = jnp.maximum(h1 @ w1 + b1, 0.0) @ w2 + b2
    return ln(h1 + f, g2, beta2)


if __name__ == "__main__":
    key = jax.random.PRNGKey(0)
    keys = jax.random.split(key, 16)

    def w(k, shape, scale=0.05):
        return (scale * jax.random.normal(k, shape)).astype(jnp.float32)

    params = (
        w(keys[0], (D_MODEL, D_MODEL)), w(keys[1], (1, D_MODEL)),   # Wq, bq
        w(keys[2], (D_MODEL, D_MODEL)), w(keys[3], (1, D_MODEL)),   # Wk, bk
        w(keys[4], (D_MODEL, D_MODEL)), w(keys[5], (1, D_MODEL)),   # Wv, bv
        w(keys[6], (D_MODEL, D_MODEL)), w(keys[7], (1, D_MODEL)),   # Wo, bo
        jnp.ones((1, D_MODEL), jnp.float32), jnp.zeros((1, D_MODEL), jnp.float32),  # LN1
        w(keys[8], (D_MODEL, D_FF)),    w(keys[9], (1, D_FF)),      # FF1
        w(keys[10], (D_FF, D_MODEL)),   w(keys[11], (1, D_MODEL)),  # FF2
        jnp.ones((1, D_MODEL), jnp.float32), jnp.zeros((1, D_MODEL), jnp.float32),  # LN2
    )

    x = jax.random.normal(keys[12], (BATCH, SEQ, D_MODEL), dtype=jnp.float32)

    out = transformer_encoder_layer(x, params)
    out = jax.block_until_ready(out)

    ref = reference(x, params)
    assert out.shape == (BATCH, SEQ, D_MODEL)
    # approx=True softmax reciprocal (EUP vrcp) is ~1e-4-relative accurate;
    # use a slightly looser tolerance than exact-f32 round-off.
    assert jnp.allclose(out, ref, atol=2e-3, rtol=2e-3), "mismatch vs reference"

    print("KERNEL_OK")
</pallas_src>

<mosaic_0001>
module attributes {stable_mosaic.version = 11 : i64} {
  func.func @encoder_layer_kernel(%arg0: memref<16x32xf32, #tpu.memory_space<vmem>>, %arg1: memref<8x32x8xf32, #tpu.memory_space<vmem>>, %arg2: memref<8x1x8xf32, #tpu.memory_space<vmem>>, %arg3: memref<8x32x8xf32, #tpu.memory_space<vmem>>, %arg4: memref<8x1x8xf32, #tpu.memory_space<vmem>>, %arg5: memref<8x32x8xf32, #tpu.memory_space<vmem>>, %arg6: memref<8x1x8xf32, #tpu.memory_space<vmem>>, %arg7: memref<8x8x32xf32, #tpu.memory_space<vmem>>, %arg8: memref<1x32xf32, #tpu.memory_space<vmem>>, %arg9: memref<1x32xf32, #tpu.memory_space<vmem>>, %arg10: memref<1x32xf32, #tpu.memory_space<vmem>>, %arg11: memref<32x64xf32, #tpu.memory_space<vmem>>, %arg12: memref<1x64xf32, #tpu.memory_space<vmem>>, %arg13: memref<64x32xf32, #tpu.memory_space<vmem>>, %arg14: memref<1x32xf32, #tpu.memory_space<vmem>>, %arg15: memref<1x32xf32, #tpu.memory_space<vmem>>, %arg16: memref<1x32xf32, #tpu.memory_space<vmem>>, %arg17: memref<16x32xf32, #tpu.memory_space<vmem>>) attributes {dimension_semantics = [], scalar_prefetch = 0 : i64, scratch_operands = 0 : i64, tpu.core_type = #tpu.core_type<tc>} {
    %c0 = arith.constant 0 : index
    %c0_0 = arith.constant 0 : index
    %0 = vector.load %arg0[%c0, %c0_0] : memref<16x32xf32, #tpu.memory_space<vmem>>, vector<16x32xf32>
    %1 = vector.shape_cast %0 : vector<16x32xf32> to vector<2x1x8x32xf32>
    %2 = vector.shape_cast %1 : vector<2x1x8x32xf32> to vector<2x1x8x32xf32>
    %3 = vector.broadcast %2 : vector<2x1x8x32xf32> to vector<2x4x8x32xf32>
    %4 = vector.shape_cast %3 : vector<2x4x8x32xf32> to vector<8x8x32xf32>
    %c0_1 = arith.constant 0 : index
    %c0_2 = arith.constant 0 : index
    %c0_3 = arith.constant 0 : index
    %5 = vector.load %arg1[%c0_1, %c0_2, %c0_3] : memref<8x32x8xf32, #tpu.memory_space<vmem>>, vector<8x32x8xf32>
    "tpu.trace_start"() <{level = 10 : i32, message = "nsd,nde->nse"}> : () -> ()
    %cst = arith.constant dense<0.000000e+00> : vector<8x8x8xf32>
    %6 = tpu.matmul %4, %5, %cst {dimension_numbers = #tpu.dot_dimension_numbers<[2], [1], [1], [2], [0, 0, 0, 1, 1, 2], [0], [0]>} : vector<8x8x32xf32>, vector<8x32x8xf32>, vector<8x8x8xf32> -> vector<8x8x8xf32>
    "tpu.trace_stop"() : () -> ()
    %c0_4 = arith.constant 0 : index
    %c0_5 = arith.constant 0 : index
    %c0_6 = arith.constant 0 : index
    %7 = vector.load %arg2[%c0_4, %c0_5, %c0_6] : memref<8x1x8xf32, #tpu.memory_space<vmem>>, vector<8x1x8xf32>
    %8 = vector.broadcast %7 : vector<8x1x8xf32> to vector<8x8x8xf32>
    %9 = arith.addf %6, %8 : vector<8x8x8xf32>
    %c0_7 = arith.constant 0 : index
    %c0_8 = arith.constant 0 : index
    %c0_9 = arith.constant 0 : index
    %10 = vector.load %arg3[%c0_7, %c0_8, %c0_9] : memref<8x32x8xf32, #tpu.memory_space<vmem>>, vector<8x32x8xf32>
    "tpu.trace_start"() <{level = 10 : i32, message = "nsd,nde->nse"}> : () -> ()
    %cst_10 = arith.constant dense<0.000000e+00> : vector<8x8x8xf32>
    %11 = tpu.matmul %4, %10, %cst_10 {dimension_numbers = #tpu.dot_dimension_numbers<[2], [1], [1], [2], [0, 0, 0, 1, 1, 2], [0], [0]>} : vector<8x8x32xf32>, vector<8x32x8xf32>, vector<8x8x8xf32> -> vector<8x8x8xf32>
    "tpu.trace_stop"() : () -> ()
    %c0_11 = arith.constant 0 : index
    %c0_12 = arith.constant 0 : index
    %c0_13 = arith.constant 0 : index
    %12 = vector.load %arg4[%c0_11, %c0_12, %c0_13] : memref<8x1x8xf32, #tpu.memory_space<vmem>>, vector<8x1x8xf32>
    %13 = vector.broadcast %12 : vector<8x1x8xf32> to vector<8x8x8xf32>
    %14 = arith.addf %11, %13 : vector<8x8x8xf32>
    %c0_14 = arith.constant 0 : index
    %c0_15 = arith.constant 0 : index
    %c0_16 = arith.constant 0 : index
    %15 = vector.load %arg5[%c0_14, %c0_15, %c0_16] : memref<8x32x8xf32, #tpu.memory_space<vmem>>, vector<8x32x8xf32>
    "tpu.trace_start"() <{level = 10 : i32, message = "nsd,nde->nse"}> : () -> ()
    %cst_17 = arith.constant dense<0.000000e+00> : vector<8x8x8xf32>
    %16 = tpu.matmul %4, %15, %cst_17 {dimension_numbers = #tpu.dot_dimension_numbers<[2], [1], [1], [2], [0, 0, 0, 1, 1, 2], [0], [0]>} : vector<8x8x32xf32>, vector<8x32x8xf32>, vector<8x8x8xf32> -> vector<8x8x8xf32>
    "tpu.trace_stop"() : () -> ()
    %c0_18 = arith.constant 0 : index
    %c0_19 = arith.constant 0 : index
    %c0_20 = arith.constant 0 : index
    %17 = vector.load %arg6[%c0_18, %c0_19, %c0_20] : memref<8x1x8xf32, #tpu.memory_space<vmem>>, vector<8x1x8xf32>
    %18 = vector.broadcast %17 : vector<8x1x8xf32> to vector<8x8x8xf32>
    %19 = arith.addf %16, %18 : vector<8x8x8xf32>
    "tpu.trace_start"() <{level = 10 : i32, message = "nqe,nke->nqk"}> : () -> ()
    %cst_21 = arith.constant dense<0.000000e+00> : vector<8x8x8xf32>
    %20 = tpu.matmul %9, %14, %cst_21 {dimension_numbers = #tpu.dot_dimension_numbers<[2], [2], [1], [1], [0, 0, 0, 1, 1, 1], [0], [0]>} : vector<8x8x8xf32>, vector<8x8x8xf32>, vector<8x8x8xf32> -> vector<8x8x8xf32>
    "tpu.trace_stop"() : () -> ()
    %cst_22 = arith.constant 0.353553385 : f32
    %21 = vector.broadcast %cst_22 : f32 to vector<8x8x8xf32>
    %22 = arith.mulf %20, %21 : vector<8x8x8xf32>
    %cst_23 = arith.constant dense<0xFF800000> : vector<8x8xf32>
    %23 = vector.multi_reduction <maximumf>, %22, %cst_23 [2] : vector<8x8x8xf32> to vector<8x8xf32>
    %24 = vector.shape_cast %23 : vector<8x8xf32> to vector<8x8x1xf32>
    %25 = vector.broadcast %24 : vector<8x8x1xf32> to vector<8x8x8xf32>
    %26 = arith.subf %22, %25 : vector<8x8x8xf32>
    %27 = math.exp %26 : vector<8x8x8xf32>
    %cst_24 = arith.constant dense<0.000000e+00> : vector<8x8xf32>
    %28 = vector.multi_reduction <add>, %27, %cst_24 [2] : vector<8x8x8xf32> to vector<8x8xf32>
    %29 = vector.shape_cast %28 : vector<8x8xf32> to vector<8x8x1xf32>
    %30 = tpu.reciprocal %29 {approx = true} : vector<8x8x1xf32> -> vector<8x8x1xf32>
    %31 = vector.broadcast %30 : vector<8x8x1xf32> to vector<8x8x8xf32>
    %32 = arith.mulf %27, %31 : vector<8x8x8xf32>
    "tpu.trace_start"() <{level = 10 : i32, message = "nqk,nke->nqe"}> : () -> ()
    %cst_25 = arith.constant dense<0.000000e+00> : vector<8x8x8xf32>
    %33 = tpu.matmul %32, %19, %cst_25 {dimension_numbers = #tpu.dot_dimension_numbers<[2], [1], [1], [2], [0, 0, 0, 1, 1, 2], [0], [0]>} : vector<8x8x8xf32>, vector<8x8x8xf32>, vector<8x8x8xf32> -> vector<8x8x8xf32>
    "tpu.trace_stop"() : () -> ()
    %c0_26 = arith.constant 0 : index
    %c0_27 = arith.constant 0 : index
    %c0_28 = arith.constant 0 : index
    %34 = vector.load %arg7[%c0_26, %c0_27, %c0_28] : memref<8x8x32xf32, #tpu.memory_space<vmem>>, vector<8x8x32xf32>
    "tpu.trace_start"() <{level = 10 : i32, message = "nse,ned->nsd"}> : () -> ()
    %cst_29 = arith.constant dense<0.000000e+00> : vector<8x8x32xf32>
    %35 = tpu.matmul %33, %34, %cst_29 {dimension_numbers = #tpu.dot_dimension_numbers<[2], [1], [1], [2], [0, 0, 0, 1, 1, 2], [0], [0]>} : vector<8x8x8xf32>, vector<8x8x32xf32>, vector<8x8x32xf32> -> vector<8x8x32xf32>
    "tpu.trace_stop"() : () -> ()
    %36 = vector.shape_cast %35 : vector<8x8x32xf32> to vector<2x4x8x32xf32>
    %37 = vector.extract_strided_slice %36 {offsets = [0, 0, 0, 0], sizes = [2, 1, 8, 32], strides = [1, 1, 1, 1]} : vector<2x4x8x32xf32> to vector<2x1x8x32xf32>
    %38 = vector.shape_cast %37 : vector<2x1x8x32xf32> to vector<2x8x32xf32>
    %39 = vector.extract_strided_slice %36 {offsets = [0, 1, 0, 0], sizes = [2, 1, 8, 32], strides = [1, 1, 1, 1]} : vector<2x4x8x32xf32> to vector<2x1x8x32xf32>
    %40 = vector.shape_cast %39 : vector<2x1x8x32xf32> to vector<2x8x32xf32>
    %41 = arith.addf %38, %40 : vector<2x8x32xf32>
    %42 = vector.extract_strided_slice %36 {offsets = [0, 2, 0, 0], sizes = [2, 1, 8, 32], strides = [1, 1, 1, 1]} : vector<2x4x8x32xf32> to vector<2x1x8x32xf32>
    %43 = vector.shape_cast %42 : vector<2x1x8x32xf32> to vector<2x8x32xf32>
    %44 = arith.addf %41, %43 : vector<2x8x32xf32>
    %45 = vector.extract_strided_slice %36 {offsets = [0, 3, 0, 0], sizes = [2, 1, 8, 32], strides = [1, 1, 1, 1]} : vector<2x4x8x32xf32> to vector<2x1x8x32xf32>
    %46 = vector.shape_cast %45 : vector<2x1x8x32xf32> to vector<2x8x32xf32>
    %47 = arith.addf %44, %46 : vector<2x8x32xf32>
    %48 = vector.shape_cast %47 : vector<2x8x32xf32> to vector<16x32xf32>
    %c0_30 = arith.constant 0 : index
    %c0_31 = arith.constant 0 : index
    %49 = vector.load %arg8[%c0_30, %c0_31] : memref<1x32xf32, #tpu.memory_space<vmem>>, vector<1x32xf32>
    %50 = vector.broadcast %49 : vector<1x32xf32> to vector<16x32xf32>
    %51 = arith.addf %48, %50 : vector<16x32xf32>
    %52 = arith.addf %0, %51 : vector<16x32xf32>
    %cst_32 = arith.constant dense<0.000000e+00> : vector<16xf32>
    %53 = vector.multi_reduction <add>, %52, %cst_32 [1] : vector<16x32xf32> to vector<16xf32>
    %54 = vector.shape_cast %53 : vector<16xf32> to vector<16x1xf32>
    %cst_33 = arith.constant 3.200000e+01 : f32
    %55 = vector.broadcast %cst_33 : f32 to vector<16x1xf32>
    %56 = arith.divf %54, %55 : vector<16x1xf32>
    %57 = vector.broadcast %56 : vector<16x1xf32> to vector<16x32xf32>
    %58 = arith.subf %52, %57 : vector<16x32xf32>
    %59 = arith.mulf %58, %58 : vector<16x32xf32>
    %cst_34 = arith.constant dense<0.000000e+00> : vector<16xf32>
    %60 = vector.multi_reduction <add>, %59, %cst_34 [1] : vector<16x32xf32> to vector<16xf32>
    %61 = vector.shape_cast %60 : vector<16xf32> to vector<16x1xf32>
    %cst_35 = arith.constant 3.200000e+01 : f32
    %62 = vector.broadcast %cst_35 : f32 to vector<16x1xf32>
    %63 = arith.divf %61, %62 : vector<16x1xf32>
    %64 = vector.broadcast %56 : vector<16x1xf32> to vector<16x32xf32>
    %65 = arith.subf %52, %64 : vector<16x32xf32>
    %cst_36 = arith.constant 9.99999974E-6 : f32
    %66 = vector.broadcast %cst_36 : f32 to vector<16x1xf32>
    %67 = arith.addf %63, %66 : vector<16x1xf32>
    %68 = math.rsqrt %67 : vector<16x1xf32>
    %69 = vector.broadcast %68 : vector<16x1xf32> to vector<16x32xf32>
    %70 = arith.mulf %65, %69 : vector<16x32xf32>
    %c0_37 = arith.constant 0 : index
    %c0_38 = arith.constant 0 : index
    %71 = vector.load %arg9[%c0_37, %c0_38] : memref<1x32xf32, #tpu.memory_space<vmem>>, vector<1x32xf32>
    %72 = vector.broadcast %71 : vector<1x32xf32> to vector<16x32xf32>
    %73 = arith.mulf %70, %72 : vector<16x32xf32>
    %c0_39 = arith.constant 0 : index
    %c0_40 = arith.constant 0 : index
    %74 = vector.load %arg10[%c0_39, %c0_40] : memref<1x32xf32, #tpu.memory_space<vmem>>, vector<1x32xf32>
    %75 = vector.broadcast %74 : vector<1x32xf32> to vector<16x32xf32>
    %76 = arith.addf %73, %75 : vector<16x32xf32>
    %c0_41 = arith.constant 0 : index
    %c0_42 = arith.constant 0 : index
    %77 = vector.load %arg11[%c0_41, %c0_42] : memref<32x64xf32, #tpu.memory_space<vmem>>, vector<32x64xf32>
    %cst_43 = arith.constant dense<0.000000e+00> : vector<16x64xf32>
    %78 = tpu.matmul %76, %77, %cst_43 {dimension_numbers = #tpu.dot_dimension_numbers<[1], [0], [0], [1], [0, 0, 1, 1], [], []>} : vector<16x32xf32>, vector<32x64xf32>, vector<16x64xf32> -> vector<16x64xf32>
    %c0_44 = arith.constant 0 : index
    %c0_45 = arith.constant 0 : index
    %79 = vector.load %arg12[%c0_44, %c0_45] : memref<1x64xf32, #tpu.memory_space<vmem>>, vector<1x64xf32>
    %80 = vector.broadcast %79 : vector<1x64xf32> to vector<16x64xf32>
    %81 = arith.addf %78, %80 : vector<16x64xf32>
    %cst_46 = arith.constant 0.000000e+00 : f32
    %82 = vector.broadcast %cst_46 : f32 to vector<16x64xf32>
    %83 = arith.maximumf %81, %82 : vector<16x64xf32>
    %c0_47 = arith.constant 0 : index
    %c0_48 = arith.constant 0 : index
    %84 = vector.load %arg13[%c0_47, %c0_48] : memref<64x32xf32, #tpu.memory_space<vmem>>, vector<64x32xf32>
    %cst_49 = arith.constant dense<0.000000e+00> : vector<16x32xf32>
    %85 = tpu.matmul %83, %84, %cst_49 {dimension_numbers = #tpu.dot_dimension_numbers<[1], [0], [0], [1], [0, 0, 1, 1], [], []>} : vector<16x64xf32>, vector<64x32xf32>, vector<16x32xf32> -> vector<16x32xf32>
    %c0_50 = arith.constant 0 : index
    %c0_51 = arith.constant 0 : index
    %86 = vector.load %arg14[%c0_50, %c0_51] : memref<1x32xf32, #tpu.memory_space<vmem>>, vector<1x32xf32>
    %87 = vector.broadcast %86 : vector<1x32xf32> to vector<16x32xf32>
    %88 = arith.addf %85, %87 : vector<16x32xf32>
    %89 = arith.addf %76, %88 : vector<16x32xf32>
    %cst_52 = arith.constant dense<0.000000e+00> : vector<16xf32>
    %90 = vector.multi_reduction <add>, %89, %cst_52 [1] : vector<16x32xf32> to vector<16xf32>
    %91 = vector.shape_cast %90 : vector<16xf32> to vector<16x1xf32>
    %cst_53 = arith.constant 3.200000e+01 : f32
    %92 = vector.broadcast %cst_53 : f32 to vector<16x1xf32>
    %93 = arith.divf %91, %92 : vector<16x1xf32>
    %94 = vector.broadcast %93 : vector<16x1xf32> to vector<16x32xf32>
    %95 = arith.subf %89, %94 : vector<16x32xf32>
    %96 = arith.mulf %95, %95 : vector<16x32xf32>
    %cst_54 = arith.constant dense<0.000000e+00> : vector<16xf32>
    %97 = vector.multi_reduction <add>, %96, %cst_54 [1] : vector<16x32xf32> to vector<16xf32>
    %98 = vector.shape_cast %97 : vector<16xf32> to vector<16x1xf32>
    %cst_55 = arith.constant 3.200000e+01 : f32
    %99 = vector.broadcast %cst_55 : f32 to vector<16x1xf32>
    %100 = arith.divf %98, %99 : vector<16x1xf32>
    %101 = vector.broadcast %93 : vector<16x1xf32> to vector<16x32xf32>
    %102 = arith.subf %89, %101 : vector<16x32xf32>
    %cst_56 = arith.constant 9.99999974E-6 : f32
    %103 = vector.broadcast %cst_56 : f32 to vector<16x1xf32>
    %104 = arith.addf %100, %103 : vector<16x1xf32>
    %105 = math.rsqrt %104 : vector<16x1xf32>
    %106 = vector.broadcast %105 : vector<16x1xf32> to vector<16x32xf32>
    %107 = arith.mulf %102, %106 : vector<16x32xf32>
    %c0_57 = arith.constant 0 : index
    %c0_58 = arith.constant 0 : index
    %108 = vector.load %arg15[%c0_57, %c0_58] : memref<1x32xf32, #tpu.memory_space<vmem>>, vector<1x32xf32>
    %109 = vector.broadcast %108 : vector<1x32xf32> to vector<16x32xf32>
    %110 = arith.mulf %107, %109 : vector<16x32xf32>
    %c0_59 = arith.constant 0 : index
    %c0_60 = arith.constant 0 : index
    %111 = vector.load %arg16[%c0_59, %c0_60] : memref<1x32xf32, #tpu.memory_space<vmem>>, vector<1x32xf32>
    %112 = vector.broadcast %111 : vector<1x32xf32> to vector<16x32xf32>
    %113 = arith.addf %110, %112 : vector<16x32xf32>
    %c0_61 = arith.constant 0 : index
    %c0_62 = arith.constant 0 : index
    %114 = vector.load %arg17[%c0_61, %c0_62] : memref<16x32xf32, #tpu.memory_space<vmem>>, vector<16x32xf32>
    tpu.vector_store %arg17[%c0_61, %c0_62], %113 {strides = array<i32>} : memref<16x32xf32, #tpu.memory_space<vmem>>, vector<16x32xf32>,
    return
  }
}

</mosaic_0001>

<bundles_post_ra>
// kernel: transformer_encoder_layer.1
= control target key start
LH: loop header
LB: loop body
LE: loop exit
PB: predicated region body
PF: predicated region fallthrough
CT: control target
= control target key end

     0   :  { %s6018_s0 = inlined_call_operand.vmem [shape: f32[16,32], index: 0, kind: input, shape index: {}]   ;;  %s6019_s1 = inlined_call_operand.vmem [shape: f32[8,32,8], index: 1, kind: input, shape index: {}]   ;;  %s6020_s2 = inlined_call_operand.vmem [shape: f32[8,1,8], index: 2, kind: input, shape index: {}]   ;;  %s6021_s3 = inlined_call_operand.vmem [shape: f32[8,32,8], index: 3, kind: input, shape index: {}]   ;;  %s6022_s4 = inlined_call_operand.vmem [shape: f32[8,1,8], index: 4, kind: input, shape index: {}]   ;;  %s6023_s5 = inlined_call_operand.vmem [shape: f32[8,32,8], index: 5, kind: input, shape index: {}]   ;;  %s6024_s6 = inlined_call_operand.vmem [shape: f32[8,1,8], index: 6, kind: input, shape index: {}]   ;;  %s6025_s7 = inlined_call_operand.vmem [shape: f32[8,8,32], index: 7, kind: input, shape index: {}]   ;;  %s6026_s8 = inlined_call_operand.vmem [shape: f32[1,32], index: 8, kind: input, shape index: {}]   ;;  %s6027_s9 = inlined_call_operand.vmem [shape: f32[1,32], index: 9, kind: input, shape index: {}]   ;;  %s6028_s10 = inlined_call_operand.vmem [shape: f32[1,32], index: 10, kind: input, shape index: {}]   ;;  %s6029_s11 = inlined_call_operand.vmem [shape: f32[32,64], index: 11, kind: input, shape index: {}]   ;;  %s6030_s12 = inlined_call_operand.vmem [shape: f32[1,64], index: 12, kind: input, shape index: {}]   ;;  %s6031_s13 = inlined_call_operand.vmem [shape: f32[64,32], index: 13, kind: input, shape index: {}]   ;;  %s6032_s14 = inlined_call_operand.vmem [shape: f32[1,32], index: 14, kind: input, shape index: {}]   ;;  %s6033_s15 = inlined_call_operand.vmem [shape: f32[1,32], index: 15, kind: input, shape index: {}]   ;;  %s6034_s16 = inlined_call_operand.vmem [shape: f32[1,32], index: 16, kind: input, shape index: {}]   ;;  %s6035_s17 = inlined_call_operand.hbm [shape: f32[16,32], index: 17, kind: output, shape index: {}]  }
   0x1   :  { %6038 = sst [smem:[#allocation5_spill]] %s6018_s0 }
   0x2   :  { %6039 = sst [smem:[#allocation6_spill]] %s6019_s1 }
   0x3   :  { %s6040_s26 = sld [smem:[#allocation6_spill]]  ;;  %v5137_v3 = vmov 0.0|0.0   ;;  %vm5138_vm0 = vmmov 0   ;;  %v5139_v11 = vmov 0.0   ;;  %s6041_s22 = sld [smem:[#allocation5_spill]]  ;;  %vm147_vm1 = vcmask 261120  }
   0x4   :  { %4897 = vmatprep.subr.bf16.mxu0 %v5137_v3  ;;  %4903 = vmatprep.subr.bf16.mxu1 %v5137_v3 }
   0x5   :  { %4491 = vmatprep.mubr.msk.f32.mxu0 %vm5138_vm0, %v5139_v11  ;;  %4502 = vmatprep.mubr.msk.f32.mxu1 %vm5138_vm0, %v5139_v11 }
   0x9   :  { %v59_v0 = vld [vmem:[%s6040_s26] sm:$0xff]  ;;  %v60_v1 = vld [vmem:[%s6040_s26 + $0x8] sm:$0xff]  ;;  %v61_v6 = vld [vmem:[%s6040_s26 + $0x10] sm:$0xff] }
   0xa   :  { %v63_v2 = vld [vmem:[%s6040_s26 + $0x20] sm:$0xff]  ;;  %v4898_v4 = vpack.c.bf16 %v60_v1, %v59_v0  ;;  %v64_v5 = vld [vmem:[%s6040_s26 + $0x28] sm:$0xff]  ;;  %v62_v7 = vld [vmem:[%s6040_s26 + $0x18] sm:$0xff] }
   0xb   :  { %v4904_v8 = vpack.c.bf16 %v64_v5, %v63_v2  ;;  %v65_v9 = vld [vmem:[%s6040_s26 + $0x30] sm:$0xff]  ;;  %v66_v10 = vld [vmem:[%s6040_s26 + $0x38] sm:$0xff]  ;;  %v4901_v12 = vpack.c.bf16 %v62_v7, %v61_v6  ;;  %v67_v14 = vld [vmem:[%s6040_s26 + $0x40] sm:$0xff] }
   0xc   :  { %4899 = vmatpush3.bf16.msra.mxu0 %v4898_v4  ;;  %v4907_v13 = vpack.c.bf16 %v66_v10, %v65_v9  ;;  %v68_v15 = vld [vmem:[%s6040_s26 + $0x48] sm:$0xff]  ;;  %v71_v16 = vld [vmem:[%s6040_s26 + $0x60] sm:$0xff]  ;;  %v69_v21 = vld [vmem:[%s6040_s26 + $0x50] sm:$0xff] }
   0xd   :  { %4905 = vmatpush3.bf16.msra.mxu1 %v4904_v8  ;;  %4900 = vmatprep.subr.bf16.mxu0 %v5137_v3  ;;  %v72_v17 = vld [vmem:[%s6040_s26 + $0x68] sm:$0xff]  ;;  %v5280_v18 = vld [vmem:[%s6041_s22] sm:$0xff]  ;;  %v4910_v19 = vpack.c.bf16 %v68_v15, %v67_v14  ;;  %v70_v22 = vld [vmem:[%s6040_s26 + $0x58] sm:$0xff] }
   0xe   :  { %4906 = vmatprep.subr.bf16.mxu1 %v5137_v3  ;;  %v4916_v20 = vpack.c.bf16 %v72_v17, %v71_v16  ;;  %v73_v23 = vld [vmem:[%s6040_s26 + $0x70] sm:$0xff]  ;;  %v74_v24 = vld [vmem:[%s6040_s26 + $0x78] sm:$0xff]  ;;  %v4913_v25 = vpack.c.bf16 %v70_v22, %v69_v21  ;;  %v75_v27 = vld [vmem:[%s6040_s26 + $0x80] sm:$0xff] }
   0xf   :  { %v4919_v26 = vpack.c.bf16 %v74_v24, %v73_v23  ;;  %v76_v28 = vld [vmem:[%s6040_s26 + $0x88] sm:$0xff]  ;;  %v79_v29 = vld [vmem:[%s6040_s26 + $0xa0] sm:$0xff]  ;;  %v77_v33 = vld [vmem:[%s6040_s26 + $0x90] sm:$0xff] }
  0x10   :  { %4902 = vmatpush3.bf16.msra.mxu0 %v4901_v12  ;;  %v80_v30 = vld [vmem:[%s6040_s26 + $0xa8] sm:$0xff]  ;;  %v4922_v31 = vpack.c.bf16 %v76_v28, %v75_v27  ;;  %v78_v34 = vld [vmem:[%s6040_s26 + $0x98] sm:$0xff]  ;;  %v81_v35 = vld [vmem:[%s6040_s26 + $0xb0] sm:$0xff] }
  0x11   :  { %4908 = vmatpush3.bf16.msra.mxu1 %v4907_v13  ;;  %4909 = vmatprep.subr.bf16.mxu0 %v5137_v3  ;;  %v4928_v32 = vpack.c.bf16 %v80_v30, %v79_v29  ;;  %v82_v36 = vld [vmem:[%s6040_s26 + $0xb8] sm:$0xff]  ;;  %v4925_v37 = vpack.c.bf16 %v78_v34, %v77_v33  ;;  %v83_v39 = vld [vmem:[%s6040_s26 + $0xc0] sm:$0xff]  ;;  %v84_v40 = vld [vmem:[%s6040_s26 + $0xc8] sm:$0xff] }
  0x12   :  { %4915 = vmatprep.subr.bf16.mxu1 %v5137_v3  ;;  %v4931_v38 = vpack.c.bf16 %v82_v36, %v81_v35  ;;  %v87_v41 = vld [vmem:[%s6040_s26 + $0xe0] sm:$0xff]  ;;  %v88_v42 = vld [vmem:[%s6040_s26 + $0xe8] sm:$0xff]  ;;  %v4934_v44 = vpack.c.bf16 %v84_v40, %v83_v39 }
  0x13   :  { %4492 = vmatmul.mubr.msk.f32.vlgmr.msra.gmra.mrb[0].mxu0 %vm147_vm1, %v5280_v18  ;;  %v5357_v43 = vld [vmem:[%s6041_s22 + $0x8] sm:$0xff] }
  0x14   :  { %4503 = vmatmul.mubr.msk.f32.vlgmr.msra.gmra.mrb[0].mxu1 %vm147_vm1, %v5280_v18  ;;  %4911 = vmatpush3.bf16.msra.mxu0 %v4910_v19 }
  0x15   :  { %4917 = vmatpush3.bf16.msra.mxu1 %v4916_v20  ;;  %4912 = vmatprep.subr.bf16.mxu0 %v5137_v3 }
  0x16   :  { %4918 = vmatprep.subr.bf16.mxu1 %v5137_v3  ;;  %4513 = vmatprep.mubr.msk.f32.mxu0 %vm5138_vm0, %v5139_v11 }
  0x17   :  { %4524 = vmatprep.mubr.msk.f32.mxu1 %vm5138_vm0, %v5139_v11 }
  0x18   :  { %4914 = vmatpush3.bf16.msra.mxu0 %v4913_v25 }
  0x19   :  { %4920 = vmatpush3.bf16.msra.mxu1 %v4919_v26  ;;  %4921 = vmatprep.subr.bf16.mxu0 %v5137_v3 }
  0x1a   :  { %4927 = vmatprep.subr.bf16.mxu1 %v5137_v3 }
  0x1b   :  { %4514 = vmatmul.mubr.msk.f32.vlgmr.msra.gmra.mrb[2].mxu0 %vm147_vm1, %v5280_v18 }
  0x1c   :  { %4525 = vmatmul.mubr.msk.f32.vlgmr.msra.gmra.mrb[2].mxu1 %vm147_vm1, %v5280_v18  ;;  %4923 = vmatpush3.bf16.msra.mxu0 %v4922_v31 }
  0x1d   :  { %4929 = vmatpush3.bf16.msra.mxu1 %v4928_v32  ;;  %4924 = vmatprep.subr.bf16.mxu0 %v5137_v3 }
  0x1e   :  { %4930 = vmatprep.subr.bf16.mxu1 %v5137_v3  ;;  %4535 = vmatprep.mubr.msk.f32.mxu0 %vm5138_vm0, %v5139_v11 }
  0x1f   :  { %4546 = vmatprep.mubr.msk.f32.mxu1 %vm5138_vm0, %v5139_v11 }
  0x20   :  { %4926 = vmatpush3.bf16.msra.mxu0 %v4925_v37 }
  0x21   :  { %22 = vsyncpa [#allocation3], 0  ;;  %4932 = vmatpush3.bf16.msra.mxu1 %v4931_v38  ;;  %4933 = vmatprep.subr.bf16.mxu0 %v5137_v3  ;;  %v4940_v45 = vpack.c.bf16 %v88_v42, %v87_v41  ;;  %v85_v46 = vld [vmem:[%s6040_s26 + $0xd0] sm:$0xff]  ;;  %v86_v47 = vld [vmem:[%s6040_s26 + $0xd8] sm:$0xff]  ;;  %vm2010_vm2 = vcmask 64512   ;;  %vm4062_vm3 = vcmask 523264  }
  0x22   :  { %4939 = vmatprep.subr.bf16.mxu1 %v5137_v3  ;;  %v89_v48 = vld [vmem:[%s6040_s26 + $0xf0] sm:$0xff]  ;;  %v90_v49 = vld [vmem:[%s6040_s26 + $0xf8] sm:$0xff]  ;;  %v4937_v50 = vpack.c.bf16 %v86_v47, %v85_v46  ;;  %v714_v52 = vld [vmem:[%s6021_s3] sm:$0xff]  ;;  %s5140_s25 = smov [#allocation2]  }
  0x23   :  { %4536 = vmatmul.mubr.msk.f32.vlgmr.msra.gmra.mrb[4].mxu0 %vm147_vm1, %v5357_v43  ;;  %v4943_v51 = vpack.c.bf16 %v90_v49, %v89_v48  ;;  %v715_v53 = vld [vmem:[%s6021_s3 + $0x8] sm:$0xff]  ;;  %v718_v54 = vld [vmem:[%s6021_s3 + $0x20] sm:$0xff]  ;;  %v716_v58 = vld [vmem:[%s6021_s3 + $0x10] sm:$0xff]  ;;  %s4197_s27 = sshll.u32 %s5140_s25, 4  ;;  %s4198_s27 = int_to_ptr.vmem [resolvable:$true] %s4197_s27 }
  0x24   :  { %4547 = vmatmul.mubr.msk.f32.vlgmr.msra.gmra.mrb[4].mxu1 %vm147_vm1, %v5357_v43  ;;  %4935 = vmatpush3.bf16.msra.mxu0 %v4934_v44  ;;  %v719_v55 = vld [vmem:[%s6021_s3 + $0x28] sm:$0xff]  ;;  %v4946_v56 = vpack.c.bf16 %v715_v53, %v714_v52  ;;  %v717_v59 = vld [vmem:[%s6021_s3 + $0x18] sm:$0xff]  ;;  %v720_v60 = vld [vmem:[%s6021_s3 + $0x30] sm:$0xff]  ;;  %s5113_s28 = scalar_lea.vmem %s4198_s27, 256  ;;  %p5118_p1 = scmp.lt.s32.totalorder %s4198_s27, %s4198_s27 }
  0x25   :  { %4941 = vmatpush3.bf16.msra.mxu1 %v4940_v45  ;;  %4936 = vmatprep.subr.bf16.mxu0 %v5137_v3  ;;  %v4952_v57 = vpack.c.bf16 %v719_v55, %v718_v54  ;;  %v721_v61 = vld [vmem:[%s6021_s3 + $0x38] sm:$0xff]  ;;  %v4949_v62 = vpack.c.bf16 %v717_v59, %v716_v58  ;;  %v722_v0 = vld [vmem:[%s6021_s3 + $0x40] sm:$0xff]  ;;  %v723_v1 = vld [vmem:[%s6021_s3 + $0x48] sm:$0xff]  ;;  %p5114_p0 = scmp.ne.s32.totalorder %s4198_s27, %s5113_s28  ;;  %p5119_p2 = scmp.lt.s32.totalorder %s5113_s28, %s5113_s28 }
  0x26   :  { %4942 = vmatprep.subr.bf16.mxu1 %v5137_v3  ;;  %4557 = vmatprep.mubr.msk.f32.mxu0 %vm5138_vm0, %v5139_v11  ;;  %v4955_v63 = vpack.c.bf16 %v721_v61, %v720_v60  ;;  %v726_v2 = vld [vmem:[%s6021_s3 + $0x60] sm:$0xff]  ;;  %v727_v4 = vld [vmem:[%s6021_s3 + $0x68] sm:$0xff]  ;;  %v4958_v5 = vpack.c.bf16 %v723_v1, %v722_v0  ;;  %v724_v7 = vld [vmem:[%s6021_s3 + $0x50] sm:$0xff] }
  0x27   :  { %4568 = vmatprep.mubr.msk.f32.mxu1 %vm5138_vm0, %v5139_v11  ;;  %v4964_v6 = vpack.c.bf16 %v727_v4, %v726_v2  ;;  %v725_v8 = vld [vmem:[%s6021_s3 + $0x58] sm:$0xff]  ;;  %v728_v9 = vld [vmem:[%s6021_s3 + $0x70] sm:$0xff]  ;;  %v730_v14 = vld [vmem:[%s6021_s3 + $0x80] sm:$0xff]  ;;  %p5120_p3 = por %p5119_p2, %p5118_p1 }
  0x28   :  { %4938 = vmatpush3.bf16.msra.mxu0 %v4937_v50  ;;  %v729_v10 = vld [vmem:[%s6021_s3 + $0x78] sm:$0xff]  ;;  %v4961_v12 = vpack.c.bf16 %v725_v8, %v724_v7  ;;  %v731_v15 = vld [vmem:[%s6021_s3 + $0x88] sm:$0xff]  ;;  %v734_v16 = vld [vmem:[%s6021_s3 + $0xa0] sm:$0xff] }
  0x29   :  { %4944 = vmatpush3.bf16.msra.mxu1 %v4943_v51  ;;  %4945 = vmatprep.subr.bf16.mxu0 %v5137_v3  ;;  %v4967_v13 = vpack.c.bf16 %v729_v10, %v728_v9  ;;  %v735_v17 = vld [vmem:[%s6021_s3 + $0xa8] sm:$0xff]  ;;  %v4970_v19 = vpack.c.bf16 %v731_v15, %v730_v14  ;;  %v732_v21 = vld [vmem:[%s6021_s3 + $0x90] sm:$0xff]  ;;  %v733_v22 = vld [vmem:[%s6021_s3 + $0x98] sm:$0xff]  ;;  %p5121_p4 = pnand %p5120_p3, %p5114_p0 }
  0x2a   :  { %4951 = vmatprep.subr.bf16.mxu1 %v5137_v3  ;;  %v4976_v20 = vpack.c.bf16 %v735_v17, %v734_v16  ;;  %v736_v23 = vld [vmem:[%s6021_s3 + $0xb0] sm:$0xff]  ;;  %v737_v24 = vld [vmem:[%s6021_s3 + $0xb8] sm:$0xff]  ;;  %v4973_v25 = vpack.c.bf16 %v733_v22, %v732_v21  ;;  %v738_v27 = vld [vmem:[%s6021_s3 + $0xc0] sm:$0xff] }
  0x2b   :  { %4558 = vmatmul.mubr.msk.f32.vlgmr.msra.gmra.mrb[6].mxu0 %vm147_vm1, %v5357_v43  ;;  %v4979_v26 = vpack.c.bf16 %v737_v24, %v736_v23  ;;  %v739_v28 = vld [vmem:[%s6021_s3 + $0xc8] sm:$0xff]  ;;  %v742_v29 = vld [vmem:[%s6021_s3 + $0xe0] sm:$0xff]  ;;  %v740_v33 = vld [vmem:[%s6021_s3 + $0xd0] sm:$0xff] }
  0x2c   :  { %4569 = vmatmul.mubr.msk.f32.vlgmr.msra.gmra.mrb[6].mxu1 %vm147_vm1, %v5357_v43  ;;  %4947 = vmatpush3.bf16.msra.mxu0 %v4946_v56  ;;  %v743_v30 = vld [vmem:[%s6021_s3 + $0xe8] sm:$0xff]  ;;  %v4982_v31 = vpack.c.bf16 %v739_v28, %v738_v27  ;;  %v741_v34 = vld [vmem:[%s6021_s3 + $0xd8] sm:$0xff]  ;;  %v744_v35 = vld [vmem:[%s6021_s3 + $0xf0] sm:$0xff] }
  0x2d   :  { %4953 = vmatpush3.bf16.msra.mxu1 %v4952_v57  ;;  %4948 = vmatprep.subr.bf16.mxu0 %v5137_v3  ;;  %v4988_v32 = vpack.c.bf16 %v743_v30, %v742_v29  ;;  %v745_v36 = vld [vmem:[%s6021_s3 + $0xf8] sm:$0xff]  ;;  %v4985_v37 = vpack.c.bf16 %v741_v34, %v740_v33  ;;  %v1362_v39 = vld [vmem:[%s6023_s5] sm:$0xff]  ;;  %v1363_v40 = vld [vmem:[%s6023_s5 + $0x8] sm:$0xff] }
  0x2e   :  { %4954 = vmatprep.subr.bf16.mxu1 %v5137_v3  ;;  %4579 = vmatprep.mubr.msk.f32.mxu0 %vm5138_vm0, %v5139_v11  ;;  %v4991_v38 = vpack.c.bf16 %v745_v36, %v744_v35  ;;  %v4994_v41 = vpack.c.bf16 %v1363_v40, %v1362_v39  ;;  %v1364_v42 = vld [vmem:[%s6023_s5 + $0x10] sm:$0xff]  ;;  %v1365_v44 = vld [vmem:[%s6023_s5 + $0x18] sm:$0xff]  ;;  %v1366_v46 = vld [vmem:[%s6023_s5 + $0x20] sm:$0xff] }
  0x2f   :  { %4590 = vmatprep.mubr.msk.f32.mxu1 %vm5138_vm0, %v5139_v11  ;;  %v4997_v45 = vpack.c.bf16 %v1365_v44, %v1364_v42  ;;  %v1367_v47 = vld [vmem:[%s6023_s5 + $0x28] sm:$0xff]  ;;  %v1370_v48 = vld [vmem:[%s6023_s5 + $0x40] sm:$0xff]  ;;  %v1368_v52 = vld [vmem:[%s6023_s5 + $0x30] sm:$0xff] }
  0x30   :  { %4950 = vmatpush3.bf16.msra.mxu0 %v4949_v62  ;;  %v5000_v49 = vpack.c.bf16 %v1367_v47, %v1366_v46  ;;  %v1371_v50 = vld [vmem:[%s6023_s5 + $0x48] sm:$0xff]  ;;  %v1369_v53 = vld [vmem:[%s6023_s5 + $0x38] sm:$0xff]  ;;  %v1372_v54 = vld [vmem:[%s6023_s5 + $0x50] sm:$0xff] }
  0x31   :  { %4956 = vmatpush3.bf16.msra.mxu1 %v4955_v63  ;;  %4957 = vmatprep.subr.bf16.mxu0 %v5137_v3  ;;  %v5006_v51 = vpack.c.bf16 %v1371_v50, %v1370_v48  ;;  %v5003_v55 = vpack.c.bf16 %v1369_v53, %v1368_v52  ;;  %v1373_v56 = vld [vmem:[%s6023_s5 + $0x58] sm:$0xff]  ;;  %v1374_v58 = vld [vmem:[%s6023_s5 + $0x60] sm:$0xff]  ;;  %v1375_v59 = vld [vmem:[%s6023_s5 + $0x68] sm:$0xff] }
  0x32   :  { %4963 = vmatprep.subr.bf16.mxu1 %v5137_v3  ;;  %v5009_v57 = vpack.c.bf16 %v1373_v56, %v1372_v54  ;;  %v1378_v60 = vld [vmem:[%s6023_s5 + $0x80] sm:$0xff]  ;;  %v5012_v61 = vpack.c.bf16 %v1375_v59, %v1374_v58  ;;  %v1379_v62 = vld [vmem:[%s6023_s5 + $0x88] sm:$0xff]  ;;  %v1376_v0 = vld [vmem:[%s6023_s5 + $0x70] sm:$0xff] }
  0x33   :  { %4580 = vmatmul.mubr.msk.f32.vlgmr.msra.gmra.mrb[8].mxu0 %vm147_vm1, %v5280_v18  ;;  %v5018_v63 = vpack.c.bf16 %v1379_v62, %v1378_v60  ;;  %v1377_v1 = vld [vmem:[%s6023_s5 + $0x78] sm:$0xff]  ;;  %v1380_v2 = vld [vmem:[%s6023_s5 + $0x90] sm:$0xff]  ;;  %v1382_v7 = vld [vmem:[%s6023_s5 + $0xa0] sm:$0xff] }
  0x34   :  { %4591 = vmatmul.mubr.msk.f32.vlgmr.msra.gmra.mrb[8].mxu1 %vm147_vm1, %v5280_v18  ;;  %4959 = vmatpush3.bf16.msra.mxu0 %v4958_v5  ;;  %v5015_v4 = vpack.c.bf16 %v1377_v1, %v1376_v0  ;;  %v1381_v5 = vld [vmem:[%s6023_s5 + $0x98] sm:$0xff]  ;;  %v1383_v8 = vld [vmem:[%s6023_s5 + $0xa8] sm:$0xff]  ;;  %v1386_v9 = vld [vmem:[%s6023_s5 + $0xc0] sm:$0xff] }
  0x35   :  { %4965 = vmatpush3.bf16.msra.mxu1 %v4964_v6  ;;  %4960 = vmatprep.subr.bf16.mxu0 %v5137_v3  ;;  %v5021_v6 = vpack.c.bf16 %v1381_v5, %v1380_v2  ;;  %v5024_v10 = vpack.c.bf16 %v1383_v8, %v1382_v7  ;;  %v1384_v14 = vld [vmem:[%s6023_s5 + $0xb0] sm:$0xff]  ;;  %v1385_v15 = vld [vmem:[%s6023_s5 + $0xb8] sm:$0xff]  ;;  %v1391_v21 = vld [vmem:[%s6023_s5 + $0xe8] sm:$0xff] }
  0x36   :  { %4966 = vmatprep.subr.bf16.mxu1 %v5137_v3  ;;  %4601 = vmatprep.mubr.msk.f32.mxu0 %vm5138_vm0, %v5139_v11  ;;  %v1388_v16 = vld [vmem:[%s6023_s5 + $0xd0] sm:$0xff]  ;;  %v1389_v17 = vld [vmem:[%s6023_s5 + $0xd8] sm:$0xff]  ;;  %v4224_v40 = vld [vmem:[%s6022_s4] ss:$0 sm:$0xff] }
  0x37   :  { %4612 = vmatprep.mubr.msk.f32.mxu1 %vm5138_vm0, %v5139_v11  ;;  %v1392_v23 = vld [vmem:[%s6023_s5 + $0xf0] sm:$0xff]  ;;  %v1393_v24 = vld [vmem:[%s6023_s5 + $0xf8] sm:$0xff]  ;;  %v4225_v42 = vld [vmem:[%s6022_s4 + $0x1] ss:$0 sm:$0xff] }
  0x38   :  { %4962 = vmatpush3.bf16.msra.mxu0 %v4961_v12  ;;  %v1387_v12 = vld [vmem:[%s6023_s5 + $0xc8] sm:$0xff]  ;;  %v4208_v44 = vld [vmem:[%s6020_s2] ss:$0 sm:$0xff]  ;;  %v4226_v52 = vld [vmem:[%s6022_s4 + $0x2] ss:$0 sm:$0xff] }
  0x39   :  { %4968 = vmatpush3.bf16.msra.mxu1 %v4967_v13  ;;  %4969 = vmatprep.subr.bf16.mxu0 %v5137_v3  ;;  %v5030_v13 = vpack.c.bf16 %v1387_v12, %v1386_v9  ;;  %v4227_v53 = vld [vmem:[%s6022_s4 + $0x3] ss:$0 sm:$0xff]  ;;  %v4210_v56 = vld [vmem:[%s6020_s2 + $0x2] ss:$0 sm:$0xff]  ;;  %v4228_v1 = vld [vmem:[%s6022_s4 + $0x4] ss:$0 sm:$0xff] }
  0x3a   :  { %4975 = vmatprep.subr.bf16.mxu1 %v5137_v3  ;;  %v4211_v60 = vld [vmem:[%s6020_s2 + $0x3] ss:$0 sm:$0xff]  ;;  %v4229_v2 = vld [vmem:[%s6022_s4 + $0x5] ss:$0 sm:$0xff]  ;;  %v4212_v5 = vld [vmem:[%s6020_s2 + $0x4] ss:$0 sm:$0xff] }
  0x3b   :  { %4602 = vmatmul.mubr.msk.f32.vlgmr.msra.gmra.mrb[10].mxu0 %vm147_vm1, %v5280_v18  ;;  %v4213_v9 = vld [vmem:[%s6020_s2 + $0x5] ss:$0 sm:$0xff] }
  0x3c   :  { %4613 = vmatmul.mubr.msk.f32.vlgmr.msra.gmra.mrb[10].mxu1 %vm147_vm1, %v5280_v18  ;;  %4971 = vmatpush3.bf16.msra.mxu0 %v4970_v19  ;;  %v5033_v19 = vpack.c.bf16 %v1389_v17, %v1388_v16  ;;  %v4231_v16 = vld [vmem:[%s6022_s4 + $0x7] ss:$0 sm:$0xff]  ;;  %v4214_v17 = vld [vmem:[%s6020_s2 + $0x6] ss:$0 sm:$0xff] }
  0x3d   :  { %4977 = vmatpush3.bf16.msra.mxu1 %v4976_v20  ;;  %4972 = vmatprep.subr.bf16.mxu0 %v5137_v3  ;;  %v1390_v20 = vld [vmem:[%s6023_s5 + $0xe0] sm:$0xff] }
  0x3e   :  { %4978 = vmatprep.subr.bf16.mxu1 %v5137_v3  ;;  %4623 = vmatprep.mubr.msk.f32.mxu0 %vm5138_vm0, %v5139_v11  ;;  %v5036_v22 = vpack.c.bf16 %v1391_v21, %v1390_v20 }
  0x3f   :  { %4634 = vmatprep.mubr.msk.f32.mxu1 %vm5138_vm0, %v5139_v11 }
  0x40   :  { %4974 = vmatpush3.bf16.msra.mxu0 %v4973_v25  ;;  %v5039_v25 = vpack.c.bf16 %v1393_v24, %v1392_v23 }
  0x41   :  { %4980 = vmatpush3.bf16.msra.mxu1 %v4979_v26  ;;  %4981 = vmatprep.subr.bf16.mxu0 %v5137_v3 }
  0x42   :  { %4987 = vmatprep.subr.bf16.mxu1 %v5137_v3 }
  0x43   :  { %4624 = vmatmul.mubr.msk.f32.vlgmr.msra.gmra.mrb[12].mxu0 %vm147_vm1, %v5357_v43 }
  0x44   :  { %4635 = vmatmul.mubr.msk.f32.vlgmr.msra.gmra.mrb[12].mxu1 %vm147_vm1, %v5357_v43  ;;  %4983 = vmatpush3.bf16.msra.mxu0 %v4982_v31 }
  0x45   :  { %4989 = vmatpush3.bf16.msra.mxu1 %v4988_v32  ;;  %4984 = vmatprep.subr.bf16.mxu0 %v5137_v3 }
  0x46   :  { %4990 = vmatprep.subr.bf16.mxu1 %v5137_v3  ;;  %4645 = vmatprep.mubr.msk.f32.mxu0 %vm5138_vm0, %v5139_v11 }
  0x47   :  { %4656 = vmatprep.mubr.msk.f32.mxu1 %vm5138_vm0, %v5139_v11 }
  0x48   :  { %4986 = vmatpush3.bf16.msra.mxu0 %v4985_v37 }
  0x49   :  { %4992 = vmatpush3.bf16.msra.mxu1 %v4991_v38  ;;  %4993 = vmatprep.subr.bf16.mxu0 %v5137_v3 }
  0x4a   :  { %4999 = vmatprep.subr.bf16.mxu1 %v5137_v3 }
  0x4b   :  { %4646 = vmatmul.mubr.msk.f32.vlgmr.msra.gmra.mrb[14].mxu0 %vm147_vm1, %v5357_v43 }
  0x4c   :  { %4657 = vmatmul.mubr.msk.f32.vlgmr.msra.gmra.mrb[14].mxu1 %vm147_vm1, %v5357_v43  ;;  %4995 = vmatpush3.bf16.msra.mxu0 %v4994_v41 }
  0x4d   :  { %4996 = vmatprep.subr.bf16.mxu0 %v5137_v3  ;;  %4667 = vmatprep.mubr.msk.f32.mxu0 %vm5138_vm0, %v5139_v11 }
  0x4e   :  { %4678 = vmatprep.mubr.msk.f32.mxu1 %vm5138_vm0, %v5139_v11  ;;  %5001 = vmatpush3.bf16.msra.mxu1 %v5000_v49 }
  0x4f   :  { %5002 = vmatprep.subr.bf16.mxu1 %v5137_v3 }
  0x50   :  { %4998 = vmatpush3.bf16.msra.mxu0 %v4997_v45 }
  0x51   :  { %5005 = vmatprep.subr.bf16.mxu0 %v5137_v3 }
  0x52   :  { %5004 = vmatpush3.bf16.msra.mxu1 %v5003_v55 }
  0x53   :  { %4668 = vmatmul.mubr.msk.f32.vlgmr.msra.gmra.mrb[16].mxu0 %vm147_vm1, %v5280_v18  ;;  %5011 = vmatprep.subr.bf16.mxu1 %v5137_v3 }
  0x54   :  { %5007 = vmatpush3.bf16.msra.mxu0 %v5006_v51  ;;  %4689 = vmatprep.mubr.msk.f32.mxu0 %vm5138_vm0, %v5139_v11  ;;  %v4209_v51 = vld [vmem:[%s6020_s2 + $0x1] ss:$0 sm:$0xff] }
  0x55   :  { %5008 = vmatprep.subr.bf16.mxu0 %v5137_v3  ;;  %4679 = vmatmul.mubr.msk.f32.vlgmr.msra.gmra.mrb[16].mxu1 %vm147_vm1, %v5280_v18 }
  0x56   :  { %5013 = vmatpush3.bf16.msra.mxu1 %v5012_v61  ;;  %4700 = vmatprep.mubr.msk.f32.mxu1 %vm5138_vm0, %v5139_v11 }
  0x57   :  { %5014 = vmatprep.subr.bf16.mxu1 %v5137_v3 }
  0x58   :  { %5010 = vmatpush3.bf16.msra.mxu0 %v5009_v57 }
  0x59   :  { %5017 = vmatprep.subr.bf16.mxu0 %v5137_v3 }
  0x5a   :  { %5016 = vmatpush3.bf16.msra.mxu1 %v5015_v4 }
  0x5b   :  { %4690 = vmatmul.mubr.msk.f32.vlgmr.msra.gmra.mrb[18].mxu0 %vm147_vm1, %v5280_v18  ;;  %5023 = vmatprep.subr.bf16.mxu1 %v5137_v3 }
  0x5c   :  { %5019 = vmatpush3.bf16.msra.mxu0 %v5018_v63  ;;  %4711 = vmatprep.mubr.msk.f32.mxu0 %vm5138_vm0, %v5139_v11 }
  0x5d   :  { %5020 = vmatprep.subr.bf16.mxu0 %v5137_v3  ;;  %4701 = vmatmul.mubr.msk.f32.vlgmr.msra.gmra.mrb[18].mxu1 %vm147_vm1, %v5280_v18  ;;  %v5027_v18 = vpack.c.bf16 %v1385_v15, %v1384_v14  ;;  %v4230_v15 = vld [vmem:[%s6022_s4 + $0x6] ss:$0 sm:$0xff] }
  0x5e   :  { %5025 = vmatpush3.bf16.msra.mxu1 %v5024_v10  ;;  %4722 = vmatprep.mubr.msk.f32.mxu1 %vm5138_vm0, %v5139_v11 }
  0x5f   :  { %5026 = vmatprep.subr.bf16.mxu1 %v5137_v3 }
  0x60   :  { %5022 = vmatpush3.bf16.msra.mxu0 %v5021_v6 }
  0x61   :  { %5029 = vmatprep.subr.bf16.mxu0 %v5137_v3 }
  0x62   :  { %5028 = vmatpush3.bf16.msra.mxu1 %v5027_v18 }
  0x63   :  { %4712 = vmatmul.mubr.msk.f32.vlgmr.msra.gmra.mrb[20].mxu0 %vm147_vm1, %v5357_v43  ;;  %5035 = vmatprep.subr.bf16.mxu1 %v5137_v3 }
  0x64   :  { %5031 = vmatpush3.bf16.msra.mxu0 %v5030_v13  ;;  %4733 = vmatprep.mubr.msk.f32.mxu0 %vm5138_vm0, %v5139_v11 }
  0x65   :  { %5032 = vmatprep.subr.bf16.mxu0 %v5137_v3  ;;  %4723 = vmatmul.mubr.msk.f32.vlgmr.msra.gmra.mrb[20].mxu1 %vm147_vm1, %v5357_v43 }
  0x66   :  { %5037 = vmatpush3.bf16.msra.mxu1 %v5036_v22  ;;  %4744 = vmatprep.mubr.msk.f32.mxu1 %vm5138_vm0, %v5139_v11  ;;  %v4215_v22 = vld [vmem:[%s6020_s2 + $0x7] ss:$0 sm:$0xff] }
  0x67   :  { %5038 = vmatprep.subr.bf16.mxu1 %v5137_v3 }
  0x68   :  { %5034 = vmatpush3.bf16.msra.mxu0 %v5033_v19 }
  0x69   :  { %4747 = vmatprep.subr.mxu0 %v5139_v11 }
  0x6a   :  { %5040 = vmatpush3.bf16.msra.mxu1 %v5039_v25 }
  0x6b   :  { %4734 = vmatmul.mubr.msk.f32.vlgmr.msra.gmra.mrb[22].mxu0 %vm147_vm1, %v5357_v43  ;;  %4762 = vmatprep.subr.mxu1 %v5139_v11 }
  0x6c   :  { %4749 = vmatprep.mubr.msk.f32.mxu0 %vm5138_vm0, %v5139_v11 }
  0x6d   :  { %4745 = vmatmul.mubr.msk.f32.vlgmr.msra.gmra.mrb[22].mxu1 %vm147_vm1, %v5357_v43 }
  0x6e   :  { %4764 = vmatprep.mubr.msk.f32.mxu1 %vm5138_vm0, %v5139_v11 }
  0xe6   :  { %v217_v3 = vpop.f32.mrb[0].mxu0 }
  0xe7   :  { %v4493_v26 = vpop.f32.mrb[1].mxu0  ;;  %v287_v27 = vpop.f32.mrb[0].mxu1  ;;  %v218_v50 = vadd.f32 %v4208_v44, %v217_v3 }
  0xe8   :  { %v4504_v28 = vpop.f32.mrb[1].mxu1  ;;  %v288_v54 = vadd.f32 %v4209_v51, %v287_v27  ;;  %v4240_v26 = vld [vmem:[%s6024_s6] ss:$0 sm:$0xff] }
  0xee   :  { %v357_v29 = vpop.f32.mrb[2].mxu0 }
  0xef   :  { %v4515_v30 = vpop.f32.mrb[3].mxu0  ;;  %v427_v31 = vpop.f32.mrb[2].mxu1  ;;  %v358_v63 = vadd.f32 %v4210_v56, %v357_v29 }
  0xf0   :  { %v4526_v32 = vpop.f32.mrb[3].mxu1  ;;  %v428_v0 = vadd.f32 %v4211_v60, %v427_v31  ;;  %v4241_v30 = vld [vmem:[%s6024_s6 + $0x1] ss:$0 sm:$0xff] }
  0xf6   :  { %v500_v33 = vpop.f32.mrb[4].mxu0 }
  0xf7   :  { %v4537_v34 = vpop.f32.mrb[5].mxu0  ;;  %v570_v35 = vpop.f32.mrb[4].mxu1  ;;  %v501_v13 = vadd.f32 %v4212_v5, %v500_v33 }
  0xf8   :  { %v4548_v36 = vpop.f32.mrb[5].mxu1  ;;  %v571_v14 = vadd.f32 %v4213_v9, %v570_v35 }
  0xfe   :  { %v5681_v37 = vpop.f32.mrb[6].mxu0 }
  0xff   :  { %v4559_v38 = vpop.f32.mrb[7].mxu0  ;;  %v5683_v39 = vpop.f32.mrb[6].mxu1  ;;  %v641_v25 = vadd.f32 %v4214_v17, %v5681_v37 }
 0x100   :  { %v4570_v43 = vpop.f32.mrb[7].mxu1  ;;  %v711_v3 = vadd.f32 %v4215_v22, %v5683_v39 }
 0x106   :  { %v868_v41 = vpop.f32.mrb[8].mxu0 }
 0x107   :  { %v869_v45 = vadd.f32 %v4224_v40, %v868_v41  ;;  %v4581_v46 = vpop.f32.mrb[9].mxu0  ;;  %v938_v47 = vpop.f32.mrb[8].mxu1 }
 0x108   :  { %v4592_v48 = vpop.f32.mrb[9].mxu1  ;;  %v939_v49 = vadd.f32 %v4225_v42, %v938_v47 }
 0x109   :  { %4748 = vmatpush3.xpose.msk.msra.mxu0 %vm2010_vm2, %v869_v45 }
 0x10a   :  { %4752 = vmatprep.subr.mxu0 %v5139_v11 }
 0x10c   :  { %4750 = vmatmul.mubr.msk.f32.vlgmr.msra.gmra.mrb[24].mxu0 %vm2010_vm2, %v218_v50 }
 0x10d   :  { %4753 = vmatpush3.xpose.msk.msra.mxu0 %vm2010_vm2, %v939_v49  ;;  %4754 = vmatprep.mubr.msk.f32.mxu0 %vm5138_vm0, %v5139_v11 }
 0x10e   :  { %v1008_v55 = vpop.f32.mrb[10].mxu0  ;;  %4757 = vmatprep.subr.mxu0 %v5139_v11 }
 0x10f   :  { %v1009_v57 = vadd.f32 %v4226_v52, %v1008_v55  ;;  %v1078_v58 = vpop.f32.mrb[10].mxu1  ;;  %v4603_v59 = vpop.f32.mrb[11].mxu0 }
 0x110   :  { %v1079_v61 = vadd.f32 %v4227_v53, %v1078_v58  ;;  %4755 = vmatmul.mubr.msk.f32.vlgmr.msra.gmra.mrb[26].mxu0 %vm2010_vm2, %v288_v54  ;;  %v4614_v62 = vpop.f32.mrb[11].mxu1 }
 0x111   :  { %4758 = vmatpush3.xpose.msk.msra.mxu0 %vm2010_vm2, %v1009_v57  ;;  %4759 = vmatprep.mubr.msk.f32.mxu0 %vm5138_vm0, %v5139_v11 }
 0x112   :  { %4763 = vmatpush3.xpose.msk.msra.mxu1 %vm2010_vm2, %v1079_v61  ;;  %4767 = vmatprep.subr.mxu0 %v5139_v11 }
 0x113   :  { %4772 = vmatprep.subr.mxu1 %v5139_v11 }
 0x114   :  { %4760 = vmatmul.mubr.msk.f32.vlgmr.msra.gmra.mrb[28].mxu0 %vm2010_vm2, %v358_v63 }
 0x115   :  { %4765 = vmatmul.mubr.msk.f32.vlgmr.msra.gmra.mrb[24].mxu1 %vm2010_vm2, %v428_v0  ;;  %4769 = vmatprep.mubr.msk.f32.mxu0 %vm5138_vm0, %v5139_v11 }
 0x116   :  { %v1148_v4 = vpop.f32.mrb[12].mxu0  ;;  %4774 = vmatprep.mubr.msk.f32.mxu1 %vm5138_vm0, %v5139_v11 }
 0x117   :  { %v1149_v6 = vadd.f32 %v4228_v1, %v1148_v4  ;;  %v1218_v7 = vpop.f32.mrb[12].mxu1  ;;  %v4625_v8 = vpop.f32.mrb[13].mxu0 }
 0x118   :  { %v1219_v10 = vadd.f32 %v4229_v2, %v1218_v7  ;;  %v4636_v12 = vpop.f32.mrb[13].mxu1 }
 0x119   :  { %4768 = vmatpush3.xpose.msk.msra.mxu0 %vm2010_vm2, %v1149_v6 }
 0x11a   :  { %4773 = vmatpush3.xpose.msk.msra.mxu1 %vm2010_vm2, %v1219_v10  ;;  %4777 = vmatprep.subr.mxu0 %v5139_v11 }
 0x11b   :  { %4782 = vmatprep.subr.mxu1 %v5139_v11 }
 0x11c   :  { %4770 = vmatmul.mubr.msk.f32.vlgmr.msra.gmra.mrb[30].mxu0 %vm2010_vm2, %v501_v13 }
 0x11d   :  { %4775 = vmatmul.mubr.msk.f32.vlgmr.msra.gmra.mrb[26].mxu1 %vm2010_vm2, %v571_v14  ;;  %4779 = vmatprep.mubr.msk.f32.mxu0 %vm5138_vm0, %v5139_v11 }
 0x11e   :  { %v1288_v18 = vpop.f32.mrb[14].mxu0  ;;  %4784 = vmatprep.mubr.msk.f32.mxu1 %vm5138_vm0, %v5139_v11 }
 0x11f   :  { %v1289_v19 = vadd.f32 %v4230_v15, %v1288_v18  ;;  %v1358_v20 = vpop.f32.mrb[14].mxu1  ;;  %v4647_v21 = vpop.f32.mrb[15].mxu0 }
 0x120   :  { %v1359_v23 = vadd.f32 %v4231_v16, %v1358_v20  ;;  %v4658_v24 = vpop.f32.mrb[15].mxu1 }
 0x121   :  { %4778 = vmatpush3.xpose.msk.msra.mxu0 %vm2010_vm2, %v1289_v19 }
 0x122   :  { %4783 = vmatpush3.xpose.msk.msra.mxu1 %vm2010_vm2, %v1359_v23  ;;  %4787 = vmatprep.subr.mxu0 %v5139_v11 }
 0x123   :  { %4792 = vmatprep.subr.mxu1 %v5139_v11 }
 0x124   :  { %4780 = vmatmul.mubr.msk.f32.vlgmr.msra.gmra.mrb[32].mxu0 %vm2010_vm2, %v641_v25 }
 0x125   :  { %4785 = vmatmul.mubr.msk.f32.vlgmr.msra.gmra.mrb[28].mxu1 %vm2010_vm2, %v711_v3  ;;  %4789 = vmatprep.mubr.msk.f32.mxu0 %vm5138_vm0, %v5139_v11 }
 0x126   :  { %4794 = vmatprep.mubr.msk.f32.mxu1 %vm5138_vm0, %v5139_v11  ;;  %v1516_v27 = vpop.f32.mrb[16].mxu0 }
 0x127   :  { %v1517_v28 = vadd.f32 %v4240_v26, %v1516_v27  ;;  %v4669_v29 = vpop.f32.mrb[17].mxu0 }
 0x128   :  { %v1586_v31 = vpop.f32.mrb[16].mxu1 }
 0x129   :  { %4788 = vmatpush3.msra.mxu0 %v1517_v28  ;;  %v1587_v33 = vadd.f32 %v4241_v30, %v1586_v31  ;;  %v4680_v34 = vpop.f32.mrb[17].mxu1 }
 0x12a   :  { %4797 = vmatprep.subr.mxu0 %v5139_v11 }
 0x12b   :  { %4793 = vmatpush3.msra.mxu1 %v1587_v33 }
 0x12c   :  { %4802 = vmatprep.subr.mxu1 %v5139_v11 }
 0x12e   :  { %v5782_v32 = vpop.f32.mrb[18].mxu0 }
 0x12f   :  { %v4691_v35 = vpop.f32.mrb[19].mxu0 }
 0x130   :  { %v5785_v36 = vpop.f32.mrb[18].mxu1 }
 0x131   :  { %v4702_v38 = vpop.f32.mrb[19].mxu1 }
 0x136   :  { %v5787_v37 = vpop.f32.mrb[20].mxu0 }
 0x137   :  { %v4713_v39 = vpop.f32.mrb[21].mxu0 }
 0x138   :  { %v5791_v41 = vpop.f32.mrb[20].mxu1 }
 0x139   :  { %v4724_v42 = vpop.f32.mrb[21].mxu1 }
 0x13e   :  { %v5789_v43 = vpop.f32.mrb[22].mxu0 }
 0x13f   :  { %v4735_v40 = vpop.f32.mrb[23].mxu0 }
 0x140   :  { %v5793_v44 = vpop.f32.mrb[22].mxu1 }
 0x141   :  { %v4746_v45 = vpop.f32.mrb[23].mxu1 }
 0x1df   :  { %v2083_v46 = vpop.f32.mrb[24].mxu0 }
 0x1e0   :  { %v2619_v47 = vmul.f32 0.35355338, %v2083_v46  ;;  %v4751_v48 = vpop.f32.mrb[25].mxu0 }
 0x1e2   :  { %v2627_v49 = vsel %vm2010_vm2, %v2619_v47, -inf }
 0x1e3   :  { %2628 = vmax.xlane.f32.xlu0 %v2627_v49  ;;  %v2159_v50 = vpop.f32.mrb[26].mxu0 }
 0x1e4   :  { %v2620_v51 = vmul.f32 0.35355338, %v2159_v50  ;;  %v4756_v52 = vpop.f32.mrb[27].mxu0 }
 0x1e6   :  { %v2630_v53 = vsel %vm2010_vm2, %v2620_v51, -inf }
 0x1e7   :  { %2631 = vmax.xlane.f32.xlu0 %v2630_v53  ;;  %v2235_v54 = vpop.f32.mrb[28].mxu0 }
 0x1e8   :  { %v2311_v55 = vpop.f32.mrb[24].mxu1  ;;  %v2621_v56 = vmul.f32 0.35355338, %v2235_v54  ;;  %v4761_v57 = vpop.f32.mrb[29].mxu0 }
 0x1e9   :  { %v4766_v58 = vpop.f32.mrb[25].mxu1  ;;  %v2622_v59 = vmul.f32 0.35355338, %v2311_v55 }
 0x1ea   :  { %v2633_v60 = vsel %vm2010_vm2, %v2621_v56, -inf }
 0x1eb   :  { %2634 = vmax.xlane.f32.xlu1 %v2633_v60  ;;  %v2636_v61 = vsel %vm2010_vm2, %v2622_v59, -inf }
 0x1ef   :  { %2637 = vmax.xlane.f32.xlu1 %v2636_v61  ;;  %v2387_v62 = vpop.f32.mrb[30].mxu0 }
 0x1f0   :  { %v2463_v63 = vpop.f32.mrb[26].mxu1  ;;  %v2623_v0 = vmul.f32 0.35355338, %v2387_v62  ;;  %v4771_v1 = vpop.f32.mrb[31].mxu0 }
 0x1f1   :  { %v2624_v2 = vmul.f32 0.35355338, %v2463_v63  ;;  %v4776_v4 = vpop.f32.mrb[27].mxu1 }
 0x1f2   :  { %v2639_v5 = vsel %vm2010_vm2, %v2623_v0, -inf }
 0x1f3   :  { %v2642_v6 = vsel %vm2010_vm2, %v2624_v2, -inf  ;;  %2640 = vmax.xlane.f32.xlu0 %v2639_v5 }
 0x1f4   :  { %2643 = vmax.xlane.f32.xlu1 %v2642_v6  ;;  %v4243_v6 = vld [vmem:[%s6024_s6 + $0x3] ss:$0 sm:$0xff] }
 0x1f7   :  { %v2539_v7 = vpop.f32.mrb[32].mxu0 }
 0x1f8   :  { %v2625_v8 = vmul.f32 0.35355338, %v2539_v7  ;;  %v2615_v9 = vpop.f32.mrb[28].mxu1  ;;  %v4781_v10 = vpop.f32.mrb[33].mxu0 }
 0x1f9   :  { %v2626_v12 = vmul.f32 0.35355338, %v2615_v9  ;;  %v4786_v13 = vpop.f32.mrb[29].mxu1  ;;  %v1727_v10 = vadd.f32 %v4243_v6, %v5785_v36  ;;  %v4245_v36 = vld [vmem:[%s6024_s6 + $0x5] ss:$0 sm:$0xff] }
 0x1fa   :  { %v2645_v14 = vsel %vm2010_vm2, %v2625_v8, -inf }
 0x1fb   :  { %v2648_v15 = vsel %vm2010_vm2, %v2626_v12, -inf  ;;  %2646 = vmax.xlane.f32.xlu0 %v2645_v14 }
 0x1fc   :  { %2649 = vmax.xlane.f32.xlu1 %v2648_v15 }
 0x270   :  { %v2629_v16 = vpop.xlane.xlu0 %2628 }
 0x271   :  { %v2651_v18 = vsub.f32 %v2619_v47, %v2629_v16 }
 0x273   :  { %v2659_v17 = vmul.f32 1.442695, %v2651_v18 }
 0x274   :  { %v2632_v19 = vpop.xlane.xlu0 %2631 }
 0x275   :  { %5071 = vpow2.f32 %v2659_v17  ;;  %v2652_v20 = vsub.f32 %v2620_v51, %v2632_v19  ;;  %v1867_v19 = vadd.f32 %v4245_v36, %v5791_v41 }
 0x277   :  { %v2661_v21 = vmul.f32 1.442695, %v2652_v20 }
 0x278   :  { %v2635_v22 = vpop.xlane.xlu1 %2634 }
 0x279   :  { %5073 = vpow2.f32 %v2661_v21  ;;  %v2653_v23 = vsub.f32 %v2621_v56, %v2635_v22  ;;  %v4247_v22 = vld [vmem:[%s6024_s6 + $0x7] ss:$0 sm:$0xff] }
 0x27b   :  { %v2663_v24 = vmul.f32 1.442695, %v2653_v23 }
 0x27c   :  { %v2638_v25 = vpop.xlane.xlu1 %2637 }
 0x27d   :  { %5075 = vpow2.f32 %v2663_v24  ;;  %v2654_v3 = vsub.f32 %v2622_v59, %v2638_v25 }
 0x27f   :  { %v5072_v26 = vpop.eup %5071  ;;  %v2665_v27 = vmul.f32 1.442695, %v2654_v3  ;;  %v2007_v3 = vadd.f32 %v4247_v22, %v5793_v44 }
 0x280   :  { %v2641_v28 = vpop.xlane.xlu0 %2640  ;;  %v2675_v29 = vsel %vm2010_vm2, %v5072_v26, 0.0 }
 0x281   :  { %5077 = vpow2.f32 %v2665_v27  ;;  %v2644_v30 = vpop.xlane.xlu1 %2643  ;;  %v2655_v31 = vsub.f32 %v2623_v0, %v2641_v28  ;;  %2676 = vadd.xlane.f32.xlu0 %v2675_v29  ;;  %v4242_v0 = vld [vmem:[%s6024_s6 + $0x2] ss:$0 sm:$0xff]  ;;  %v3300_v29 = vld [vmem:[%s6025_s7 + $0x8] sm:$0xff] }
 0x282   :  { %v2656_v33 = vsub.f32 %v2624_v2, %v2644_v30  ;;  %v1657_v5 = vadd.f32 %v4242_v0, %v5782_v32  ;;  %v4244_v32 = vld [vmem:[%s6024_s6 + $0x4] ss:$0 sm:$0xff]  ;;  %v3301_v30 = vld [vmem:[%s6025_s7 + $0x10] sm:$0xff] }
 0x283   :  { %v5074_v34 = vpop.eup %5073  ;;  %v2667_v35 = vmul.f32 1.442695, %v2655_v31  ;;  %v1797_v15 = vadd.f32 %v4244_v32, %v5787_v37  ;;  %v4246_v37 = vld [vmem:[%s6024_s6 + $0x6] ss:$0 sm:$0xff] }
 0x284   :  { %v2669_v38 = vmul.f32 1.442695, %v2656_v33  ;;  %v2678_v39 = vsel %vm2010_vm2, %v5074_v34, 0.0  ;;  %v1937_v24 = vadd.f32 %v4246_v37, %v5789_v43  ;;  %v3299_v28 = vld [vmem:[%s6025_s7] sm:$0xff]  ;;  %v5112_v37 = vld [vmem:[%s6041_s22 + $0x8] sm:$0xff] }
 0x285   :  { %5079 = vpow2.f32 %v2667_v35  ;;  %2679 = vadd.xlane.f32.xlu1 %v2678_v39  ;;  %v3303_v39 = vld [vmem:[%s6025_s7 + $0x20] sm:$0xff] }
 0x286   :  { %5081 = vpow2.f32 %v2669_v38 }
 0x287   :  { %v5076_v40 = vpop.eup %5075 }
 0x288   :  { %v2647_v42 = vpop.xlane.xlu0 %2646  ;;  %v2681_v45 = vsel %vm2010_vm2, %v5076_v40, 0.0 }
 0x289   :  { %v2650_v46 = vpop.xlane.xlu1 %2649  ;;  %v2657_v47 = vsub.f32 %v2625_v8, %v2647_v42  ;;  %2682 = vadd.xlane.f32.xlu0 %v2681_v45  ;;  %v3304_v45 = vld [vmem:[%s6025_s7 + $0x28] sm:$0xff] }
 0x28a   :  { %v2658_v48 = vsub.f32 %v2626_v12, %v2650_v46 }
 0x28b   :  { %v5078_v49 = vpop.eup %5077  ;;  %v2671_v50 = vmul.f32 1.442695, %v2657_v47 }
 0x28c   :  { %v2673_v51 = vmul.f32 1.442695, %v2658_v48  ;;  %v2684_v52 = vsel %vm2010_vm2, %v5078_v49, 0.0  ;;  %v3305_v48 = vld [vmem:[%s6025_s7 + $0x30] sm:$0xff] }
 0x28d   :  { %5083 = vpow2.f32 %v2671_v50  ;;  %2685 = vadd.xlane.f32.xlu1 %v2684_v52  ;;  %v3306_v50 = vld [vmem:[%s6025_s7 + $0x38] sm:$0xff] }
 0x28e   :  { %5085 = vpow2.f32 %v2673_v51 }
 0x28f   :  { %v5807_v53 = vpop.eup %5079 }
 0x290   :  { %v5809_v54 = vpop.eup %5081  ;;  %v2687_v55 = vsel %vm2010_vm2, %v5807_v53, 0.0 }
 0x291   :  { %v2690_v56 = vsel %vm2010_vm2, %v5809_v54, 0.0  ;;  %2688 = vadd.xlane.f32.xlu0 %v2687_v55 }
 0x292   :  { %2691 = vadd.xlane.f32.xlu1 %v2690_v56 }
 0x297   :  { %v5815_v57 = vpop.eup %5083 }
 0x298   :  { %v5817_v58 = vpop.eup %5085  ;;  %v2693_v59 = vsel %vm2010_vm2, %v5815_v57, 0.0 }
 0x299   :  { %v2696_v60 = vsel %vm2010_vm2, %v5817_v58, 0.0  ;;  %2694 = vadd.xlane.f32.xlu0 %v2693_v59 }
 0x29a   :  { %2697 = vadd.xlane.f32.xlu1 %v2696_v60 }
 0x30e   :  { %v2677_v61 = vpop.xlane.xlu0 %2676 }
 0x30f   :  { %5087 = vrcp.f32 %v2677_v61 }
 0x312   :  { %v2680_v62 = vpop.xlane.xlu1 %2679 }
 0x313   :  { %5089 = vrcp.f32 %v2680_v62 }
 0x316   :  { %v2683_v63 = vpop.xlane.xlu0 %2682 }
 0x317   :  { %5091 = vrcp.f32 %v2683_v63 }
 0x319   :  { %v5088_v1 = vpop.eup %5087 }
 0x31a   :  { %v2707_v2 = vmul.f32 %v5088_v1, %v5072_v26  ;;  %v2686_v4 = vpop.xlane.xlu1 %2685 }
 0x31b   :  { %5093 = vrcp.f32 %v2686_v4 }
 0x31c   :  { %4790 = vmatmul.mubr.msk.f32.vlgmr.msra.gmra.mrb[34].mxu0 %vm2010_vm2, %v2707_v2 }
 0x31d   :  { %v5090_v7 = vpop.eup %5089  ;;  %4798 = vmatpush3.msra.mxu0 %v1657_v5  ;;  %4799 = vmatprep.mubr.msk.f32.mxu0 %vm5138_vm0, %v5139_v11 }
 0x31e   :  { %v2708_v8 = vmul.f32 %v5090_v7, %v5074_v34  ;;  %v2689_v9 = vpop.xlane.xlu0 %2688  ;;  %4807 = vmatprep.subr.mxu0 %v5139_v11  ;;  %v3302_v34 = vld [vmem:[%s6025_s7 + $0x18] sm:$0xff] }
 0x31f   :  { %v2692_v12 = vpop.xlane.xlu1 %2691  ;;  %5095 = vrcp.f32 %v2689_v9 }
 0x320   :  { %5097 = vrcp.f32 %v2692_v12  ;;  %4795 = vmatmul.mubr.msk.f32.vlgmr.msra.gmra.mrb[30].mxu1 %vm2010_vm2, %v2708_v8 }
 0x321   :  { %v5092_v13 = vpop.eup %5091  ;;  %4803 = vmatpush3.msra.mxu1 %v1727_v10  ;;  %4804 = vmatprep.mubr.msk.f32.mxu1 %vm5138_vm0, %v5139_v11  ;;  %v5111_v10 = vld [vmem:[%s6041_s22] sm:$0xff] }
 0x322   :  { %v2709_v14 = vmul.f32 %v5092_v13, %v5076_v40  ;;  %4812 = vmatprep.subr.mxu1 %v5139_v11 }
 0x324   :  { %4800 = vmatmul.mubr.msk.f32.vlgmr.msra.gmra.mrb[36].mxu0 %vm2010_vm2, %v2709_v14 }
 0x325   :  { %v5094_v16 = vpop.eup %5093  ;;  %4808 = vmatpush3.msra.mxu0 %v1797_v15  ;;  %4809 = vmatprep.mubr.msk.f32.mxu0 %vm5138_vm0, %v5139_v11 }
 0x326   :  { %v2710_v18 = vmul.f32 %v5094_v16, %v5078_v49  ;;  %v2695_v17 = vpop.xlane.xlu0 %2694  ;;  %4817 = vmatprep.subr.mxu0 %v5139_v11 }
 0x327   :  { %v2698_v20 = vpop.xlane.xlu1 %2697  ;;  %5099 = vrcp.f32 %v2695_v17 }
 0x328   :  { %5101 = vrcp.f32 %v2698_v20  ;;  %4805 = vmatmul.mubr.msk.f32.vlgmr.msra.gmra.mrb[32].mxu1 %vm2010_vm2, %v2710_v18 }
 0x329   :  { %v5096_v21 = vpop.eup %5095  ;;  %4813 = vmatpush3.msra.mxu1 %v1867_v19  ;;  %4814 = vmatprep.mubr.msk.f32.mxu1 %vm5138_vm0, %v5139_v11 }
 0x32a   :  { %v5098_v23 = vpop.eup %5097  ;;  %v2711_v41 = vmul.f32 %v5096_v21, %v5807_v53  ;;  %4822 = vmatprep.subr.mxu1 %v5139_v11 }
 0x32b   :  { %v2712_v25 = vmul.f32 %v5098_v23, %v5809_v54 }
 0x32c   :  { %4810 = vmatmul.mubr.msk.f32.vlgmr.msra.gmra.mrb[38].mxu0 %vm2010_vm2, %v2711_v41 }
 0x32d   :  { %4815 = vmatmul.mubr.msk.f32.vlgmr.msra.gmra.mrb[34].mxu1 %vm2010_vm2, %v2712_v25  ;;  %4818 = vmatpush3.msra.mxu0 %v1937_v24 }
 0x32e   :  { %4823 = vmatpush3.msra.mxu1 %v2007_v3  ;;  %4819 = vmatprep.mubr.msk.f32.mxu0 %vm5138_vm0, %v5139_v11 }
 0x32f   :  { %4824 = vmatprep.mubr.msk.f32.mxu1 %vm5138_vm0, %v5139_v11  ;;  %4827 = vmatprep.subr.mxu0 %v5139_v11 }
 0x330   :  { %4832 = vmatprep.subr.mxu1 %v5139_v11 }
 0x331   :  { %v5100_v43 = vpop.eup %5099 }
 0x332   :  { %v5102_v26 = vpop.eup %5101  ;;  %v2713_v44 = vmul.f32 %v5100_v43, %v5815_v57 }
 0x333   :  { %v2714_v27 = vmul.f32 %v5102_v26, %v5817_v58 }
 0x334   :  { %4820 = vmatmul.mubr.msk.f32.vlgmr.msra.gmra.mrb[40].mxu0 %vm2010_vm2, %v2713_v44 }
 0x335   :  { %4825 = vmatmul.mubr.msk.f32.vlgmr.msra.gmra.mrb[36].mxu1 %vm2010_vm2, %v2714_v27  ;;  %4829 = vmatprep.mubr.msk.f32.mxu0 %vm5138_vm0, %v5139_v11 }
 0x336   :  { %4834 = vmatprep.mubr.msk.f32.mxu1 %vm5138_vm0, %v5139_v11  ;;  %4828 = vmatpush3.msra.mxu0 %v3299_v28 }
 0x337   :  { %4837 = vmatprep.subr.mxu0 %v5139_v11  ;;  %4833 = vmatpush3.msra.mxu1 %v3300_v29  ;;  %v3953_v29 = vld [vmem:[%s6029_s11] sm:$0xff] }
 0x338   :  { %4842 = vmatprep.subr.mxu1 %v5139_v11 }
 0x3ef   :  { %v2784_v31 = vpop.f32.mrb[34].mxu0 }
 0x3f0   :  { %v4791_v33 = vpop.f32.mrb[35].mxu0  ;;  %4830 = vmatmul.mubr.msk.f32.vlgmr.msra.gmra.mrb[42].mxu0 %vm2010_vm2, %v2784_v31 }
 0x3f1   :  { %4838 = vmatpush3.msra.mxu0 %v3301_v30  ;;  %4839 = vmatprep.mubr.msk.f32.mxu0 %vm5138_vm0, %v5139_v11  ;;  %v3954_v30 = vld [vmem:[%s6029_s11 + $0x8] sm:$0xff]  ;;  %v3955_v33 = vld [vmem:[%s6029_s11 + $0x10] sm:$0xff] }
 0x3f2   :  { %4847 = vmatprep.subr.mxu0 %v5139_v11  ;;  %v5041_v31 = vpack.c.bf16 %v3954_v30, %v3953_v29 }
 0x3f3   :  { %v2857_v35 = vpop.f32.mrb[30].mxu1 }
 0x3f4   :  { %v4796_v38 = vpop.f32.mrb[31].mxu1  ;;  %4835 = vmatmul.mubr.msk.f32.vlgmr.msra.gmra.mrb[38].mxu1 %vm2010_vm2, %v2857_v35 }
 0x3f5   :  { %4843 = vmatpush3.msra.mxu1 %v3302_v34  ;;  %4844 = vmatprep.mubr.msk.f32.mxu1 %vm5138_vm0, %v5139_v11  ;;  %v3956_v34 = vld [vmem:[%s6029_s11 + $0x18] sm:$0xff]  ;;  %v4047_v38 = vld [vmem:[%s6031_s13] sm:$0xff] }
 0x3f6   :  { %4852 = vmatprep.subr.mxu1 %v5139_v11  ;;  %v5045_v35 = vpack.c.bf16 %v3956_v34, %v3955_v33  ;;  %v4297_v33 = vld [vmem:[%s6033_s15] ss:$0 sm:$0xff] }
 0x3f7   :  { %v2930_v40 = vpop.f32.mrb[36].mxu0 }
 0x3f8   :  { %v4801_v42 = vpop.f32.mrb[37].mxu0  ;;  %4840 = vmatmul.mubr.msk.f32.vlgmr.msra.gmra.mrb[44].mxu0 %vm2010_vm2, %v2930_v40  ;;  %v4049_v40 = vld [vmem:[%s6031_s13 + $0x10] sm:$0xff] }
 0x3f9   :  { %4848 = vmatpush3.msra.mxu0 %v3303_v39  ;;  %4849 = vmatprep.mubr.msk.f32.mxu0 %vm5138_vm0, %v5139_v11  ;;  %v4048_v39 = vld [vmem:[%s6031_s13 + $0x8] sm:$0xff] }
 0x3fa   :  { %4857 = vmatprep.subr.mxu0 %v5139_v11  ;;  %v5049_v42 = vpack.c.bf16 %v4048_v39, %v4047_v38  ;;  %v4298_v39 = vld [vmem:[%s6034_s16] ss:$0 sm:$0xff] }
 0x3fb   :  { %v3003_v46 = vpop.f32.mrb[32].mxu1 }
 0x3fc   :  { %v4806_v47 = vpop.f32.mrb[33].mxu1  ;;  %4845 = vmatmul.mubr.msk.f32.vlgmr.msra.gmra.mrb[40].mxu1 %vm2010_vm2, %v3003_v46 }
 0x3fd   :  { %4853 = vmatpush3.msra.mxu1 %v3304_v45  ;;  %4854 = vmatprep.mubr.msk.f32.mxu1 %vm5138_vm0, %v5139_v11  ;;  %v4050_v45 = vld [vmem:[%s6031_s13 + $0x18] sm:$0xff]  ;;  %v4051_v47 = vld [vmem:[%s6031_s13 + $0x20] sm:$0xff] }
 0x3fe   :  { %4862 = vmatprep.subr.mxu1 %v5139_v11  ;;  %v5053_v46 = vpack.c.bf16 %v4050_v45, %v4049_v40 }
 0x3ff   :  { %v3076_v49 = vpop.f32.mrb[38].mxu0 }
 0x400   :  { %v3149_v51 = vpop.f32.mrb[34].mxu1  ;;  %v4811_v52 = vpop.f32.mrb[39].mxu0  ;;  %4850 = vmatmul.mubr.msk.f32.vlgmr.msra.gmra.mrb[46].mxu0 %vm2010_vm2, %v3076_v49 }
 0x401   :  { %v4816_v53 = vpop.f32.mrb[35].mxu1  ;;  %4855 = vmatmul.mubr.msk.f32.vlgmr.msra.gmra.mrb[42].mxu1 %vm2010_vm2, %v3149_v51  ;;  %4858 = vmatpush3.msra.mxu0 %v3305_v48  ;;  %v4052_v48 = vld [vmem:[%s6031_s13 + $0x28] sm:$0xff] }
 0x402   :  { %4859 = vmatprep.mubr.msk.f32.mxu0 %vm5138_vm0, %v5139_v11  ;;  %4863 = vmatpush3.msra.mxu1 %v3306_v50  ;;  %v5057_v49 = vpack.c.bf16 %v4052_v48, %v4051_v47 }
 0x403   :  { %4864 = vmatprep.mubr.msk.f32.mxu1 %vm5138_vm0, %v5139_v11  ;;  %v4288_v11 = vld [vmem:[%s6026_s8] ss:$0 sm:$0xff]  ;;  %5042 = vmatprep.subr.bf16.mxu0 %v5041_v31 }
 0x404   :  { %5050 = vmatprep.subr.bf16.mxu1 %v5049_v42 }
 0x407   :  { %v3222_v54 = vpop.f32.mrb[40].mxu0 }
 0x408   :  { %v3295_v55 = vpop.f32.mrb[36].mxu1  ;;  %v4821_v56 = vpop.f32.mrb[41].mxu0  ;;  %4860 = vmatmul.mubr.msk.f32.vlgmr.msra.gmra.mrb[48].mxu0 %vm2010_vm2, %v3222_v54 }
 0x409   :  { %v4826_v57 = vpop.f32.mrb[37].mxu1  ;;  %4865 = vmatmul.mubr.msk.f32.vlgmr.msra.gmra.mrb[44].mxu1 %vm2010_vm2, %v3295_v55  ;;  %5044 = vmatpush3.bf16.msra.mxu0 %v5041_v31  ;;  %v4289_v56 = vld [vmem:[%s6027_s9] ss:$0 sm:$0xff] }
 0x40a   :  { %5046 = vmatprep.subr.bf16.mxu0 %v5045_v35  ;;  %5052 = vmatpush3.bf16.msra.mxu1 %v5049_v42 }
 0x40b   :  { %5054 = vmatprep.subr.bf16.mxu1 %v5053_v46 }
 0x40d   :  { %5048 = vmatpush3.bf16.msra.mxu0 %v5045_v35 }
 0x40e   :  { %5056 = vmatpush3.bf16.msra.mxu1 %v5053_v46 }
 0x40f   :  { %5058 = vmatprep.subr.bf16.mxu1 %v5057_v49 }
 0x412   :  { %5060 = vmatpush3.bf16.msra.mxu1 %v5057_v49 }
 0x4c3   :  { %v3376_v58 = vpop.f32.mrb[42].mxu0 }
 0x4c4   :  { %v4831_v59 = vpop.f32.mrb[43].mxu0 }
 0x4c5   :  { %v4290_v59 = vld [vmem:[%s6028_s10] ss:$0 sm:$0xff] }
 0x4c7   :  { %v3449_v60 = vpop.f32.mrb[38].mxu1 }
 0x4c8   :  { %v3891_v61 = vadd.f32 %v3449_v60, %v3376_v58  ;;  %v4836_v62 = vpop.f32.mrb[39].mxu1 }
 0x4cb   :  { %v3522_v63 = vpop.f32.mrb[44].mxu0 }
 0x4cc   :  { %v3893_v0 = vadd.f32 %v3891_v61, %v3522_v63  ;;  %v4841_v1 = vpop.f32.mrb[45].mxu0 }
 0x4cf   :  { %v3595_v2 = vpop.f32.mrb[40].mxu1 }
 0x4d0   :  { %v3895_v4 = vadd.f32 %v3893_v0, %v3595_v2  ;;  %v4846_v5 = vpop.f32.mrb[41].mxu1  ;;  %v4053_v2 = vld [vmem:[%s6031_s13 + $0x30] sm:$0xff] }
 0x4d1   :  { %v4291_v5 = vld [vmem:[%s6030_s12] ss:$0 sm:$0xff] }
 0x4d2   :  { %v3904_v6 = vadd.f32 %v4288_v11, %v3895_v4 }
 0x4d3   :  { %v3668_v7 = vpop.f32.mrb[46].mxu0 }
 0x4d4   :  { %v3741_v8 = vpop.f32.mrb[42].mxu1  ;;  %v4851_v9 = vpop.f32.mrb[47].mxu0  ;;  %v3906_v12 = vadd.f32 %v5111_v10, %v3904_v6 }
 0x4d5   :  { %v3892_v32 = vadd.f32 %v3741_v8, %v3668_v7  ;;  %v4856_v13 = vpop.f32.mrb[43].mxu1 }
 0x4d6   :  { %v3908_v14 = vsel %vm147_vm1, %v3906_v12, 0.0 }
 0x4d7   :  { %3909 = vadd.xlane.f32.xlu0 %v3908_v14 }
 0x4db   :  { %v3814_v15 = vpop.f32.mrb[48].mxu0 }
 0x4dc   :  { %v3894_v36 = vadd.f32 %v3892_v32, %v3814_v15  ;;  %v3887_v16 = vpop.f32.mrb[44].mxu1  ;;  %v4861_v18 = vpop.f32.mrb[49].mxu0  ;;  %v4294_v32 = vld [vmem:[%s6032_s14] ss:$0 sm:$0xff] }
 0x4dd   :  { %v4866_v17 = vpop.f32.mrb[45].mxu1 }
 0x4de   :  { %v3896_v19 = vadd.f32 %v3894_v36, %v3887_v16 }
 0x4e0   :  { %v3905_v20 = vadd.f32 %v4288_v11, %v3896_v19  ;;  %v4054_v11 = vld [vmem:[%s6031_s13 + $0x38] sm:$0xff] }
 0x4e1   :  { %v5061_v4 = vpack.c.bf16 %v4054_v11, %v4053_v2 }
 0x4e2   :  { %v3907_v21 = vadd.f32 %v5112_v37, %v3905_v20 }
 0x4e3   :  { %5062 = vmatprep.subr.bf16.mxu1 %v5061_v4 }
 0x4e4   :  { %v3911_v22 = vsel %vm147_vm1, %v3907_v21, 0.0  ;;  %5064 = vmatpush3.bf16.msra.mxu1 %v5061_v4 }
 0x4e5   :  { %3912 = vadd.xlane.f32.xlu1 %v3911_v22 }
 0x564   :  { %v3910_v23 = vpop.xlane.xlu0 %3909 }
 0x565   :  { %v3915_v41 = vmul.f32 0.03125, %v3910_v23 }
 0x567   :  { %v3917_v24 = vsub.f32 %v3906_v12, %v3915_v41 }
 0x569   :  { %v3919_v25 = vmul.f32 %v3917_v24, %v3917_v24 }
 0x56b   :  { %v3921_v3 = vsel %vm147_vm1, %v3919_v25, 0.0 }
 0x56c   :  { %3922 = vadd.xlane.f32.xlu0 %v3921_v3 }
 0x572   :  { %v3913_v43 = vpop.xlane.xlu1 %3912 }
 0x573   :  { %v3916_v26 = vmul.f32 0.03125, %v3913_v43 }
 0x575   :  { %v3918_v44 = vsub.f32 %v3907_v21, %v3916_v26 }
 0x577   :  { %v3920_v27 = vmul.f32 %v3918_v44, %v3918_v44 }
 0x579   :  { %v3924_v28 = vsel %vm147_vm1, %v3920_v27, 0.0 }
 0x57a   :  { %3925 = vadd.xlane.f32.xlu1 %v3924_v28 }
 0x5f9   :  { %v3923_v50 = vpop.xlane.xlu0 %3922 }
 0x5fa   :  { %v3927_v51 = vmul.f32 0.03125, %v3923_v50 }
 0x5fc   :  { %v3929_v52 = vadd.f32 1e-05, %v3927_v51 }
 0x5fe   :  { %5103 = vrsqrt.f32 %v3929_v52 }
 0x607   :  { %v3926_v53 = vpop.xlane.xlu1 %3925 }
 0x608   :  { %v5104_v54 = vpop.eup %5103  ;;  %v3928_v55 = vmul.f32 0.03125, %v3926_v53 }
 0x609   :  { %v3933_v57 = vmul.f32 %v5104_v54, %v3917_v24 }
 0x60a   :  { %v3930_v58 = vadd.f32 1e-05, %v3928_v55 }
 0x60b   :  { %v3942_v60 = vmul.f32 %v4289_v56, %v3933_v57 }
 0x60c   :  { %5105 = vrsqrt.f32 %v3930_v58 }
 0x60d   :  { %v3951_v61 = vadd.f32 %v4290_v59, %v3942_v60 }
 0x60f   :  { %4875 = vmatprep.mubr.msk.f32.mxu0 %vm147_vm1, %v3951_v61 }
 0x616   :  { %v5106_v62 = vpop.eup %5105 }
 0x617   :  { %v3934_v63 = vmul.f32 %v5106_v62, %v3918_v44 }
 0x619   :  { %v3943_v0 = vmul.f32 %v4289_v56, %v3934_v63 }
 0x61b   :  { %v3952_v1 = vadd.f32 %v4290_v59, %v3943_v0 }
 0x61d   :  { %4876 = vmatmul.mubr.msk.f32.vlgmr.msra.gmra.mrb[50].mxu0 %vm147_vm1, %v3952_v1 }
 0x6f0   :  { %v4877_v6 = vpop.f32.mrb[50].mxu0 }
 0x6f1   :  { %v4042_v7 = vadd.f32 %v4877_v6, %v4291_v5  ;;  %v4036_v8 = vpop.f32.mrb[51].mxu0 }
 0x6f2   :  { %v4037_v9 = vadd.f32 %v4291_v5, %v4036_v8 }
 0x6f3   :  { %v4046_v12 = vmax.f32 %v4042_v7, 0.0 }
 0x6f4   :  { %v4045_v10 = vmax.f32 %v4037_v9, 0.0 }
 0x6f6   :  { %4894 = vmatprep.mubr.msk.f32.mxu1 %vm4062_vm3, %v4045_v10 }
 0x6f7   :  { %4895 = vmatmul.mubr.msk.f32.vlgmr.msra.gmra.mrb[46].mxu1 %vm4062_vm3, %v4046_v12 }
 0x7ca   :  { %v4896_v13 = vpop.f32.mrb[46].mxu1 }
 0x7cb   :  { %v4141_v14 = vadd.f32 %v4896_v13, %v4294_v32  ;;  %v4135_v15 = vpop.f32.mrb[47].mxu1 }
 0x7cc   :  { %v4136_v36 = vadd.f32 %v4294_v32, %v4135_v15 }
 0x7cd   :  { %v4145_v16 = vadd.f32 %v4141_v14, %v3952_v1 }
 0x7ce   :  { %v4144_v18 = vadd.f32 %v4136_v36, %v3951_v61 }
 0x7cf   :  { %v4149_v17 = vsel %vm147_vm1, %v4145_v16, 0.0 }
 0x7d0   :  { %4150 = vadd.xlane.f32.xlu1 %v4149_v17  ;;  %v4146_v19 = vsel %vm147_vm1, %v4144_v18, 0.0 }
 0x7d1   :  { %4147 = vadd.xlane.f32.xlu0 %v4146_v19 }
 0x85d   :  { %v4151_v20 = vpop.xlane.xlu1 %4150 }
 0x85e   :  { %v4153_v37 = vmul.f32 0.03125, %v4151_v20  ;;  %v4148_v21 = vpop.xlane.xlu0 %4147 }
 0x85f   :  { %v4152_v22 = vmul.f32 0.03125, %v4148_v21 }
 0x860   :  { %v4155_v23 = vsub.f32 %v4145_v16, %v4153_v37 }
 0x861   :  { %v4154_v41 = vsub.f32 %v4144_v18, %v4152_v22 }
 0x862   :  { %v4157_v24 = vmul.f32 %v4155_v23, %v4155_v23 }
 0x863   :  { %v4156_v25 = vmul.f32 %v4154_v41, %v4154_v41 }
 0x864   :  { %v4161_v3 = vsel %vm147_vm1, %v4157_v24, 0.0 }
 0x865   :  { %4162 = vadd.xlane.f32.xlu1 %v4161_v3  ;;  %v4158_v43 = vsel %vm147_vm1, %v4156_v25, 0.0 }
 0x866   :  { %4159 = vadd.xlane.f32.xlu0 %v4158_v43 }
 0x8f2   :  { %v4163_v26 = vpop.xlane.xlu1 %4162 }
 0x8f3   :  { %v4165_v44 = vmul.f32 0.03125, %v4163_v26  ;;  %v4160_v27 = vpop.xlane.xlu0 %4159 }
 0x8f4   :  { %v4164_v28 = vmul.f32 0.03125, %v4160_v27 }
 0x8f5   :  { %v4167_v29 = vadd.f32 1e-05, %v4165_v44 }
 0x8f6   :  { %v4166_v30 = vadd.f32 1e-05, %v4164_v28 }
 0x8f7   :  { %5107 = vrsqrt.f32 %v4167_v29 }
 0x8f8   :  { %5109 = vrsqrt.f32 %v4166_v30 }
 0x901   :  { %v5108_v31 = vpop.eup %5107 }
 0x902   :  { %v5110_v34 = vpop.eup %5109  ;;  %v4171_v35 = vmul.f32 %v5108_v31, %v4155_v23 }
 0x903   :  { %v4170_v38 = vmul.f32 %v5110_v34, %v4154_v41 }
 0x904   :  { %v4180_v40 = vmul.f32 %v4297_v33, %v4171_v35 }
 0x905   :  { %v4179_v42 = vmul.f32 %v4297_v33, %v4170_v38 }
 0x906   :  { %v4189_v45 = vadd.f32 %v4298_v39, %v4180_v40 }
 0x907   :  { %v4188_v46 = vadd.f32 %v4298_v39, %v4179_v42 }
 0x908   :  { %4191 = vst.msk [vmem:[#allocation2 + $0x8] sm:$0xff] %vm147_vm1, %v4189_v45 }
 0x909   :  { %4190 = vst.msk [vmem:[#allocation2] sm:$0xff] %vm147_vm1, %v4188_v46 }
 0x90a   :  { %5124 = shalt.err (!%p5121_p4)
}
 0x90b   :  { %s5125_s29 = scalar_lea.hbm %s6035_s17, 256 }
 0x90c   :  { %p5126_p5 = scmp.ne.s32.totalorder %s6035_s17, %s5125_s29  ;;  %p5129_p6 = scmp.lt.u32.totalorder %s5125_s29, %s6035_s17 }
 0x90e   :  { %p5131_p7 = pnand %p5129_p6, %p5126_p5 }
 0x910   :  { %5134 = shalt.err (!%p5131_p7)
}
 0x911   :  { %s5141_s11 = smov 128   ;;  %s5142_s7 = smov 8  }
 0x912   :  { %4203 = dma.vmem_to_hbm [thread:$0]  %s4198_s27, 256, %s6035_s17, [#allocation3], %s5141_s11, %s5141_s11, %s5142_s7  }
 0x913   :  { %5135 = dma.done.wait [#allocation3], 256  }
 0x914   :  { %5136 = vsyncadd [#allocation3], 4294967040 }
 0x915   :  { %4207 = vsyncpa [#allocation3], 1 }

</bundles_post_ra>
